<compile_context>
chip_gen: v5e
topology: v5e:2x2
jax: 0.10.0
libtpu: 0.0.40
codegen_flags: <defaults>
</compile_context>

<pallas_src>
import jax
import jax.numpy as jnp
from jax import lax
from jax.experimental import pallas as pl
from jax.experimental.pallas import tpu as pltpu


# ---------------------------------------------------------------------------
# Phase 1: batched utterance encoding + RNN input projection (parallel grid)
# ---------------------------------------------------------------------------
def encode_project_kernel(emb_ref, len_ref, wp_ref, bp_ref, wih_ref,
                          brnn_ref, xproj_ref):
    nb, l, e = emb_ref.shape
    lengths = len_ref[...]                                    # [NB, 1] int32

    # Rebuild the (prefix) token mask in-kernel: token_idx < length.
    tok = lax.broadcasted_iota(jnp.int32, (nb, l, e), 1)
    keep = tok < lengths[:, :, None]                          # [NB, L, E]

    # f32 accumulation regardless of the (bf16) stream dtype; upcast before
    # any VPU math so the same code is exact on v5e (no bf16 VALU).
    emb = emb_ref[...].astype(jnp.float32)
    summed = jnp.sum(jnp.where(keep, emb, 0.0), axis=1)       # [NB, E]
    denom = jnp.maximum(lengths.astype(jnp.float32), 1.0)     # [NB, 1]
    pooled_in = summed / denom                                # masked mean

    # BERT-style pooler: tanh(Linear) -> pooled_encoded_utterances.
    pooled = jnp.tanh(
        jnp.dot(pooled_in, wp_ref[...], preferred_element_type=jnp.float32)
        + bp_ref[...])                                        # [NB, Hp]

    # RNN input projection hoisted out of the recurrence:
    #   x_proj = pooled @ W_ih + (b_ih + b_hh)
    xproj_ref[...] = (
        jnp.dot(pooled, wih_ref[...], preferred_element_type=jnp.float32)
        + brnn_ref[...])                                      # [NB, Hp]


# ---------------------------------------------------------------------------
# Phase 2: sequential Elman recurrence + classifier head (single invocation)
# ---------------------------------------------------------------------------
def rnn_head_kernel(xproj_ref, whh_ref, wo_ref, bo_ref, out_ref):
    t_total, b, hp = xproj_ref.shape

    # TODO(synk): for production H >= 128, hold W_hh stationary in the MXU
    #   across steps (pltpu.matmul_push_rhs / matmul_acc_lhs / matmul_pop) to
    #   shave serial-chain latency; plain dot kept here for small-H safety.
    def step(t, h):
        return jnp.tanh(
            xproj_ref[t]
            + jnp.dot(h, whh_ref[...], preferred_element_type=jnp.float32))

    h_last = lax.fori_loop(0, t_total, step,
                           jnp.zeros((b, hp), jnp.float32),
                           unroll=min(t_total, 8))            # bounded unroll
    out_ref[...] = (
        jnp.dot(h_last, wo_ref[...], preferred_element_type=jnp.float32)
        + bo_ref[...])


# ---------------------------------------------------------------------------
# Helpers
# ---------------------------------------------------------------------------
def _round_up(x, m):
    return (x + m - 1) // m * m


def _pad_to(a, shape):
    return jnp.pad(a, [(0, t - s) for s, t in zip(a.shape, shape)])


def _const_spec(arr, pipeline_mode=None):
    nd = arr.ndim
    idx = lambda i, _nd=nd: (0,) * _nd
    if pipeline_mode is None:
        return pl.BlockSpec(arr.shape, idx)
    return pl.BlockSpec(arr.shape, idx, pipeline_mode=pipeline_mode)


def _pick_block_rows(n_rows, l, e, hp, stream_bytes, budget_bytes,
                     max_rows=1024):
    """Largest 8-aligned NB <= max_rows whose Phase-1 working set fits."""
    weights = (e * hp + hp * hp + 2 * hp) * 4        # single-buffered consts

    def step_bytes(nb):
        return (weights
                + 2 * nb * l * e * stream_bytes      # emb, double-buffered
                + nb * l * e * 4                     # in-kernel f32 upcast
                + 2 * nb * 4                         # lengths
                + 2 * nb * hp * 4)                   # xproj out

    nb = min(_round_up(max(n_rows, 1), 8), _round_up(max_rows, 8))
    if n_rows > 8:
        # Keep at least two grid steps so a "parallel" grid can shard across
        # the two TensorCores on v7x (harmless on single-TC v5e/v6e).
        nb = min(nb, _round_up((n_rows + 1) // 2, 8))
    while nb > 8 and step_bytes(nb) > budget_bytes:
        nb -= 8
    return nb


# ---------------------------------------------------------------------------
# Wrapper
# ---------------------------------------------------------------------------
def conversation_classification_hrnn(
        emb, mask, params, *,
        stream_dtype=jnp.bfloat16,
        vmem_limit_bytes=48 * 1024 * 1024,   # v7x-safe; v5e/v6e can go higher
        max_block_rows=1024):
    """emb: [T, B, L, E] f32, mask: [T, B, L] f32 -> logits [B, C] f32."""
    T, B, L, E = emb.shape
    H = params["w_ih"].shape[1]
    C = params["w_out"].shape[1]
    if T == 0:
        raise ValueError("conversation must contain at least one utterance")

    # Lane-dense padding of hidden / class dims; zero-padded weights keep the
    # math exact while avoiding masked partial stores.
    Hp = _round_up(H, 128)
    Cp = _round_up(C, 128)
    w_pool = _pad_to(params["w_pool"], (E, Hp))
    b_pool = _pad_to(params["b_pool"], (1, Hp))
    w_ih = _pad_to(params["w_ih"], (Hp, Hp))
    b_rnn = _pad_to(params["b_ih"] + params["b_hh"], (1, Hp))   # fused bias
    w_hh = _pad_to(params["w_hh"], (Hp, Hp))
    w_out = _pad_to(params["w_out"], (Hp, Cp))
    b_out = _pad_to(params["b_out"], (1, Cp))

    N = T * B
    # TODO(synk): lengths-based masking assumes contiguous prefix attention
    #   masks (standard tokenizer padding); arbitrary masks would need the
    #   full mask streamed instead.
    lengths = jnp.sum(mask, axis=-1).astype(jnp.int32).reshape(N, 1)
    emb_rows = emb.reshape(N, L, E).astype(stream_dtype)

    stream_bytes = jnp.dtype(stream_dtype).itemsize
    NB = _pick_block_rows(N, L, E, Hp, stream_bytes,
                          budget_bytes=int(0.75 * vmem_limit_bytes),
                          max_rows=max_block_rows)
    grid = pl.cdiv(N, NB)
    Np = grid * NB                                   # pad rows, never NB = N
    emb_rows = jnp.pad(emb_rows, ((0, Np - N), (0, 0), (0, 0)))
    lengths = jnp.pad(lengths, ((0, Np - N), (0, 0)))

    # ---- Phase 1: pool + pooler + input projection (parallel grid) ----
    def run_phase1(weight_mode):
        return pl.pallas_call(
            encode_project_kernel,
            out_shape=jax.ShapeDtypeStruct((Np, Hp), jnp.float32),
            grid_spec=pltpu.PrefetchScalarGridSpec(
                num_scalar_prefetch=0,
                grid=(grid,),
                in_specs=[
                    pl.BlockSpec((NB, L, E), lambda i: (i, 0, 0)),
                    pl.BlockSpec((NB, 1), lambda i: (i, 0)),
                    _const_spec(w_pool, weight_mode),
                    _const_spec(b_pool, weight_mode),
                    _const_spec(w_ih, weight_mode),
                    _const_spec(b_rnn, weight_mode),
                ],
                out_specs=pl.BlockSpec((NB, Hp), lambda i: (i, 0)),
            ),
            compiler_params=pltpu.CompilerParams(
                dimension_semantics=("parallel",),
                vmem_limit_bytes=vmem_limit_bytes),
        )(emb_rows, lengths, w_pool, b_pool, w_ih, b_rnn)

    try:
        # Single-buffer the constant weight blocks (their block index never
        # changes) so the reclaimed VMEM can fund a larger emb tile.
        xproj = run_phase1(pl.Buffered(1))
    except Exception:
        # Fallback for Pallas builds without pipeline_mode on pallas_call
        # BlockSpecs: default double-buffered weights (correctness-neutral).
        xproj = run_phase1(None)

    xproj = xproj[:N].reshape(T, B, Hp)

    # ---- Phase 2: all T recurrence steps + classifier in one kernel ----
    logits = pl.pallas_call(
        rnn_head_kernel,
        out_shape=jax.ShapeDtypeStruct((B, Cp), jnp.float32),
        grid_spec=pltpu.PrefetchScalarGridSpec(
            num_scalar_prefetch=0,
            grid=(1,),
            in_specs=[
                _const_spec(xproj),
                _const_spec(w_hh),
                _const_spec(w_out),
                _const_spec(b_out),
            ],
            out_specs=pl.BlockSpec((B, Cp), lambda i: (0, 0)),
        ),
        compiler_params=pltpu.CompilerParams(
            dimension_semantics=("arbitrary",)),
    )(xproj, w_hh, w_out, b_out)

    return logits[:, :C]


# ---------------------------------------------------------------------------
# Pure-JAX reference with identical semantics
# ---------------------------------------------------------------------------
def reference_forward(emb, mask, params):
    def pool_one(e, m):   # e: [B, L, E], m: [B, L]
        s = jnp.sum(e * m[:, :, None], axis=1)
        d = jnp.maximum(jnp.sum(m, axis=1, keepdims=True), 1.0)
        return jnp.tanh((s / d) @ params["w_pool"] + params["b_pool"])

    pooled = jax.vmap(pool_one)(emb, mask)   # [T, B, H]

    def step(h, x):
        h = jnp.tanh(x @ params["w_ih"] + params["b_ih"]
                     + h @ params["w_hh"] + params["b_hh"])
        return h, h

    h0 = jnp.zeros((emb.shape[1], params["w_ih"].shape[1]), jnp.float32)
    h_last, _ = jax.lax.scan(step, h0, pooled)
    return h_last @ params["w_out"] + params["b_out"]


if __name__ == "__main__":
    # Small, deterministic shapes.  N = T*B = 15 exercises grid padding.
    T, B, L = 5, 3, 16          # conversation turns, batch, tokens/utterance
    V, E, H, C = 64, 32, 32, 4  # vocab, embed dim, rnn hidden, n_classes

    key = jax.random.PRNGKey(0)
    keys = jax.random.split(key, 12)

    # Weights stored transposed vs PyTorch's [out, in] layout so kernels do
    # x @ W + b directly.
    params = {
        "embed":  0.1 * jax.random.normal(keys[0], (V, E), jnp.float32),
        "w_pool": 0.1 * jax.random.normal(keys[1], (E, H), jnp.float32),
        "b_pool": 0.1 * jax.random.normal(keys[2], (1, H), jnp.float32),
        "w_ih":   0.1 * jax.random.normal(keys[3], (H, H), jnp.float32),
        "b_ih":   0.1 * jax.random.normal(keys[4], (1, H), jnp.float32),
        "w_hh":   0.1 * jax.random.normal(keys[5], (H, H), jnp.float32),
        "b_hh":   0.1 * jax.random.normal(keys[6], (1, H), jnp.float32),
        "w_out":  0.1 * jax.random.normal(keys[7], (H, C), jnp.float32),
        "b_out":  0.1 * jax.random.normal(keys[8], (1, C), jnp.float32),
    }

    # Inputs: token ids and attention masks per conversation turn.
    tokens = jax.random.randint(keys[9], (T, B, L), 0, V, dtype=jnp.int32)
    lens = jax.random.randint(keys[10], (T, B), 4, L + 1, dtype=jnp.int32)
    mask = (jnp.arange(L, dtype=jnp.int32)[None, None, :]
            < lens[:, :, None]).astype(jnp.float32)            # [T, B, L]

    # Embedding lookup (glue, plain JAX).
    emb = params["embed"][tokens]                               # [T, B, L, E]

    ref = reference_forward(emb, mask, params)

    # max_block_rows=8 exercises the multi-step parallel grid + row padding
    # (N = 15 -> grid of 2 with one pad row) at this toy size; production
    # derives the block purely from the VMEM budget.
    logits_f32 = conversation_classification_hrnn(
        emb, mask, params, stream_dtype=jnp.float32, max_block_rows=8)
    logits_f32 = jax.block_until_ready(logits_f32)
    assert logits_f32.shape == (B, C)
    assert jnp.allclose(logits_f32, ref, atol=1e-5, rtol=1e-5), (
        f"f32 mismatch: {logits_f32} vs {ref}")

    # Production path: bf16 emb streaming (f32 accumulation in-kernel).
    logits_bf16 = conversation_classification_hrnn(
        emb, mask, params, stream_dtype=jnp.bfloat16, max_block_rows=8)
    logits_bf16 = jax.block_until_ready(logits_bf16)
    assert logits_bf16.shape == (B, C)
    assert jnp.allclose(logits_bf16, ref, atol=2e-2, rtol=2e-2), (
        f"bf16 mismatch: {logits_bf16} vs {ref}")

    print("KERNEL_OK")
</pallas_src>

<mosaic_0001>
module attributes {stable_mosaic.version = 11 : i64} {
  func.func @encode_project_kernel(%arg0: i32, %arg1: memref<8x16x32xf32, #tpu.memory_space<vmem>>, %arg2: memref<8x1xi32, #tpu.memory_space<vmem>>, %arg3: memref<32x128xf32, #tpu.memory_space<vmem>>, %arg4: memref<1x128xf32, #tpu.memory_space<vmem>>, %arg5: memref<128x128xf32, #tpu.memory_space<vmem>>, %arg6: memref<1x128xf32, #tpu.memory_space<vmem>>, %arg7: memref<8x128xf32, #tpu.memory_space<vmem>>) attributes {dimension_semantics = [#tpu.dimension_semantics<parallel>], iteration_bounds = array<i64: 2>, scalar_prefetch = 0 : i64, scratch_operands = 0 : i64, tpu.core_type = #tpu.core_type<tc>, window_params = [{transform_indices = @transform_0, window_bounds = array<i64: 8, 16, 32>}, {transform_indices = @transform_1, window_bounds = array<i64: 8, 1>}, {pipeline_mode = #tpu.pipeline_mode<synchronous>, transform_indices = @transform_2, window_bounds = array<i64: 32, 128>}, {pipeline_mode = #tpu.pipeline_mode<synchronous>, transform_indices = @transform_3, window_bounds = array<i64: 1, 128>}, {pipeline_mode = #tpu.pipeline_mode<synchronous>, transform_indices = @transform_4, window_bounds = array<i64: 128, 128>}, {pipeline_mode = #tpu.pipeline_mode<synchronous>, transform_indices = @transform_5, window_bounds = array<i64: 1, 128>}, {transform_indices = @transform_6, window_bounds = array<i64: 8, 128>}]} {
    %c0 = arith.constant 0 : index
    %c0_0 = arith.constant 0 : index
    %0 = vector.load %arg2[%c0, %c0_0] : memref<8x1xi32, #tpu.memory_space<vmem>>, vector<8x1xi32>
    %1 = tpu.iota {dimensions = array<i32: 1>} : vector<8x16x32xi32>
    %2 = vector.shape_cast %0 : vector<8x1xi32> to vector<8x1x1xi32>
    %3 = vector.broadcast %2 : vector<8x1x1xi32> to vector<8x16x32xi32>
    %4 = arith.cmpi slt, %1, %3 : vector<8x16x32xi32>
    %c0_1 = arith.constant 0 : index
    %c0_2 = arith.constant 0 : index
    %c0_3 = arith.constant 0 : index
    %5 = vector.load %arg1[%c0_1, %c0_2, %c0_3] : memref<8x16x32xf32, #tpu.memory_space<vmem>>, vector<8x16x32xf32>
    %cst = arith.constant 0.000000e+00 : f32
    %6 = vector.broadcast %cst : f32 to vector<8x16x32xf32>
    %7 = arith.select %4, %5, %6 : vector<8x16x32xi1>, vector<8x16x32xf32>
    %cst_4 = arith.constant dense<0.000000e+00> : vector<8x32xf32>
    %8 = vector.multi_reduction <add>, %7, %cst_4 [1] : vector<8x16x32xf32> to vector<8x32xf32>
    %9 = arith.sitofp %0 : vector<8x1xi32> to vector<8x1xf32>
    %cst_5 = arith.constant 1.000000e+00 : f32
    %10 = vector.broadcast %cst_5 : f32 to vector<8x1xf32>
    %11 = arith.maximumf %9, %10 : vector<8x1xf32>
    %12 = vector.broadcast %11 : vector<8x1xf32> to vector<8x32xf32>
    %13 = arith.divf %8, %12 : vector<8x32xf32>
    %c0_6 = arith.constant 0 : index
    %c0_7 = arith.constant 0 : index
    %14 = vector.load %arg3[%c0_6, %c0_7] : memref<32x128xf32, #tpu.memory_space<vmem>>, vector<32x128xf32>
    %cst_8 = arith.constant dense<0.000000e+00> : vector<8x128xf32>
    %15 = tpu.matmul %13, %14, %cst_8 {dimension_numbers = #tpu.dot_dimension_numbers<[1], [0], [0], [1], [0, 0, 1, 1], [], []>} : vector<8x32xf32>, vector<32x128xf32>, vector<8x128xf32> -> vector<8x128xf32>
    %c0_9 = arith.constant 0 : index
    %c0_10 = arith.constant 0 : index
    %16 = vector.load %arg4[%c0_9, %c0_10] : memref<1x128xf32, #tpu.memory_space<vmem>>, vector<1x128xf32>
    %17 = vector.broadcast %16 : vector<1x128xf32> to vector<8x128xf32>
    %18 = arith.addf %15, %17 : vector<8x128xf32>
    %19 = math.tanh %18 : vector<8x128xf32>
    %c0_11 = arith.constant 0 : index
    %c0_12 = arith.constant 0 : index
    %20 = vector.load %arg5[%c0_11, %c0_12] : memref<128x128xf32, #tpu.memory_space<vmem>>, vector<128x128xf32>
    %cst_13 = arith.constant dense<0.000000e+00> : vector<8x128xf32>
    %21 = tpu.matmul %19, %20, %cst_13 {dimension_numbers = #tpu.dot_dimension_numbers<[1], [0], [0], [1], [0, 0, 1, 1], [], []>} : vector<8x128xf32>, vector<128x128xf32>, vector<8x128xf32> -> vector<8x128xf32>
    %c0_14 = arith.constant 0 : index
    %c0_15 = arith.constant 0 : index
    %22 = vector.load %arg6[%c0_14, %c0_15] : memref<1x128xf32, #tpu.memory_space<vmem>>, vector<1x128xf32>
    %23 = vector.broadcast %22 : vector<1x128xf32> to vector<8x128xf32>
    %24 = arith.addf %21, %23 : vector<8x128xf32>
    %c0_16 = arith.constant 0 : index
    %c0_17 = arith.constant 0 : index
    %25 = vector.load %arg7[%c0_16, %c0_17] : memref<8x128xf32, #tpu.memory_space<vmem>>, vector<8x128xf32>
    tpu.vector_store %arg7[%c0_16, %c0_17], %24 {strides = array<i32>} : memref<8x128xf32, #tpu.memory_space<vmem>>, vector<8x128xf32>,
    return
  }
  func.func @transform_0(%arg0: i32) -> (i32, i32, i32) {
    %c0_i32 = arith.constant 0 : i32
    %c0_i32_0 = arith.constant 0 : i32
    %c0_i32_1 = arith.constant 0 : i32
    return %arg0, %c0_i32, %c0_i32_0 : i32, i32, i32
  }
  func.func @transform_1(%arg0: i32) -> (i32, i32) {
    %c0_i32 = arith.constant 0 : i32
    %c0_i32_0 = arith.constant 0 : i32
    return %arg0, %c0_i32 : i32, i32
  }
  func.func @transform_2(%arg0: i32) -> (i32, i32) {
    %c0_i32 = arith.constant 0 : i32
    %c0_i32_0 = arith.constant 0 : i32
    %c0_i32_1 = arith.constant 0 : i32
    return %c0_i32, %c0_i32_0 : i32, i32
  }
  func.func @transform_3(%arg0: i32) -> (i32, i32) {
    %c0_i32 = arith.constant 0 : i32
    %c0_i32_0 = arith.constant 0 : i32
    %c0_i32_1 = arith.constant 0 : i32
    return %c0_i32, %c0_i32_0 : i32, i32
  }
  func.func @transform_4(%arg0: i32) -> (i32, i32) {
    %c0_i32 = arith.constant 0 : i32
    %c0_i32_0 = arith.constant 0 : i32
    %c0_i32_1 = arith.constant 0 : i32
    return %c0_i32, %c0_i32_0 : i32, i32
  }
  func.func @transform_5(%arg0: i32) -> (i32, i32) {
    %c0_i32 = arith.constant 0 : i32
    %c0_i32_0 = arith.constant 0 : i32
    %c0_i32_1 = arith.constant 0 : i32
    return %c0_i32, %c0_i32_0 : i32, i32
  }
  func.func @transform_6(%arg0: i32) -> (i32, i32) {
    %c0_i32 = arith.constant 0 : i32
    %c0_i32_0 = arith.constant 0 : i32
    return %arg0, %c0_i32 : i32, i32
  }
}

module attributes {stable_mosaic.version = 11 : i64} {
  func.func @encode_project_kernel(%arg0: i32, %arg1: memref<8x16x32xf32, #tpu.memory_space<vmem>>, %arg2: memref<8x1xi32, #tpu.memory_space<vmem>>, %arg3: memref<32x128xf32, #tpu.memory_space<vmem>>, %arg4: memref<1x128xf32, #tpu.memory_space<vmem>>, %arg5: memref<128x128xf32, #tpu.memory_space<vmem>>, %arg6: memref<1x128xf32, #tpu.memory_space<vmem>>, %arg7: memref<8x128xf32, #tpu.memory_space<vmem>>) attributes {dimension_semantics = [#tpu.dimension_semantics<parallel>], iteration_bounds = array<i64: 2>, scalar_prefetch = 0 : i64, scratch_operands = 0 : i64, tpu.core_type = #tpu.core_type<tc>, window_params = [{transform_indices = @transform_0, window_bounds = array<i64: 8, 16, 32>}, {transform_indices = @transform_1, window_bounds = array<i64: 8, 1>}, {pipeline_mode = #tpu.pipeline_mode<synchronous>, transform_indices = @transform_2, window_bounds = array<i64: 32, 128>}, {pipeline_mode = #tpu.pipeline_mode<synchronous>, transform_indices = @transform_3, window_bounds = array<i64: 1, 128>}, {pipeline_mode = #tpu.pipeline_mode<synchronous>, transform_indices = @transform_4, window_bounds = array<i64: 128, 128>}, {pipeline_mode = #tpu.pipeline_mode<synchronous>, transform_indices = @transform_5, window_bounds = array<i64: 1, 128>}, {transform_indices = @transform_6, window_bounds = array<i64: 8, 128>}]} {
    %c0 = arith.constant 0 : index
    %c0_0 = arith.constant 0 : index
    %0 = vector.load %arg2[%c0, %c0_0] : memref<8x1xi32, #tpu.memory_space<vmem>>, vector<8x1xi32>
    %1 = tpu.iota {dimensions = array<i32: 1>} : vector<8x16x32xi32>
    %2 = vector.shape_cast %0 : vector<8x1xi32> to vector<8x1x1xi32>
    %3 = vector.broadcast %2 : vector<8x1x1xi32> to vector<8x16x32xi32>
    %4 = arith.cmpi slt, %1, %3 : vector<8x16x32xi32>
    %c0_1 = arith.constant 0 : index
    %c0_2 = arith.constant 0 : index
    %c0_3 = arith.constant 0 : index
    %5 = vector.load %arg1[%c0_1, %c0_2, %c0_3] : memref<8x16x32xf32, #tpu.memory_space<vmem>>, vector<8x16x32xf32>
    %cst = arith.constant 0.000000e+00 : f32
    %6 = vector.broadcast %cst : f32 to vector<8x16x32xf32>
    %7 = arith.select %4, %5, %6 : vector<8x16x32xi1>, vector<8x16x32xf32>
    %cst_4 = arith.constant dense<0.000000e+00> : vector<8x32xf32>
    %8 = vector.multi_reduction <add>, %7, %cst_4 [1] : vector<8x16x32xf32> to vector<8x32xf32>
    %9 = arith.sitofp %0 : vector<8x1xi32> to vector<8x1xf32>
    %cst_5 = arith.constant 1.000000e+00 : f32
    %10 = vector.broadcast %cst_5 : f32 to vector<8x1xf32>
    %11 = arith.maximumf %9, %10 : vector<8x1xf32>
    %12 = vector.broadcast %11 : vector<8x1xf32> to vector<8x32xf32>
    %13 = arith.divf %8, %12 : vector<8x32xf32>
    %c0_6 = arith.constant 0 : index
    %c0_7 = arith.constant 0 : index
    %14 = vector.load %arg3[%c0_6, %c0_7] : memref<32x128xf32, #tpu.memory_space<vmem>>, vector<32x128xf32>
    %cst_8 = arith.constant dense<0.000000e+00> : vector<8x128xf32>
    %15 = tpu.matmul %13, %14, %cst_8 {dimension_numbers = #tpu.dot_dimension_numbers<[1], [0], [0], [1], [0, 0, 1, 1], [], []>} : vector<8x32xf32>, vector<32x128xf32>, vector<8x128xf32> -> vector<8x128xf32>
    %c0_9 = arith.constant 0 : index
    %c0_10 = arith.constant 0 : index
    %16 = vector.load %arg4[%c0_9, %c0_10] : memref<1x128xf32, #tpu.memory_space<vmem>>, vector<1x128xf32>
    %17 = vector.broadcast %16 : vector<1x128xf32> to vector<8x128xf32>
    %18 = arith.addf %15, %17 : vector<8x128xf32>
    %19 = math.tanh %18 : vector<8x128xf32>
    %c0_11 = arith.constant 0 : index
    %c0_12 = arith.constant 0 : index
    %20 = vector.load %arg5[%c0_11, %c0_12] : memref<128x128xf32, #tpu.memory_space<vmem>>, vector<128x128xf32>
    %cst_13 = arith.constant dense<0.000000e+00> : vector<8x128xf32>
    %21 = tpu.matmul %19, %20, %cst_13 {dimension_numbers = #tpu.dot_dimension_numbers<[1], [0], [0], [1], [0, 0, 1, 1], [], []>} : vector<8x128xf32>, vector<128x128xf32>, vector<8x128xf32> -> vector<8x128xf32>
    %c0_14 = arith.constant 0 : index
    %c0_15 = arith.constant 0 : index
    %22 = vector.load %arg6[%c0_14, %c0_15] : memref<1x128xf32, #tpu.memory_space<vmem>>, vector<1x128xf32>
    %23 = vector.broadcast %22 : vector<1x128xf32> to vector<8x128xf32>
    %24 = arith.addf %21, %23 : vector<8x128xf32>
    %c0_16 = arith.constant 0 : index
    %c0_17 = arith.constant 0 : index
    %25 = vector.load %arg7[%c0_16, %c0_17] : memref<8x128xf32, #tpu.memory_space<vmem>>, vector<8x128xf32>
    tpu.vector_store %arg7[%c0_16, %c0_17], %24 {strides = array<i32>} : memref<8x128xf32, #tpu.memory_space<vmem>>, vector<8x128xf32>,
    return
  }
  func.func @transform_0(%arg0: i32) -> (i32, i32, i32) {
    %c0_i32 = arith.constant 0 : i32
    %c0_i32_0 = arith.constant 0 : i32
    %c0_i32_1 = arith.constant 0 : i32
    return %arg0, %c0_i32, %c0_i32_0 : i32, i32, i32
  }
  func.func @transform_1(%arg0: i32) -> (i32, i32) {
    %c0_i32 = arith.constant 0 : i32
    %c0_i32_0 = arith.constant 0 : i32
    return %arg0, %c0_i32 : i32, i32
  }
  func.func @transform_2(%arg0: i32) -> (i32, i32) {
    %c0_i32 = arith.constant 0 : i32
    %c0_i32_0 = arith.constant 0 : i32
    %c0_i32_1 = arith.constant 0 : i32
    return %c0_i32, %c0_i32_0 : i32, i32
  }
  func.func @transform_3(%arg0: i32) -> (i32, i32) {
    %c0_i32 = arith.constant 0 : i32
    %c0_i32_0 = arith.constant 0 : i32
    %c0_i32_1 = arith.constant 0 : i32
    return %c0_i32, %c0_i32_0 : i32, i32
  }
  func.func @transform_4(%arg0: i32) -> (i32, i32) {
    %c0_i32 = arith.constant 0 : i32
    %c0_i32_0 = arith.constant 0 : i32
    %c0_i32_1 = arith.constant 0 : i32
    return %c0_i32, %c0_i32_0 : i32, i32
  }
  func.func @transform_5(%arg0: i32) -> (i32, i32) {
    %c0_i32 = arith.constant 0 : i32
    %c0_i32_0 = arith.constant 0 : i32
    %c0_i32_1 = arith.constant 0 : i32
    return %c0_i32, %c0_i32_0 : i32, i32
  }
  func.func @transform_6(%arg0: i32) -> (i32, i32) {
    %c0_i32 = arith.constant 0 : i32
    %c0_i32_0 = arith.constant 0 : i32
    return %arg0, %c0_i32 : i32, i32
  }
}

</mosaic_0001>

<bundles_post_ra>
// kernel: tpu_custom_call.1
= control target key start
LH: loop header
LB: loop body
LE: loop exit
PB: predicated region body
PF: predicated region fallthrough
CT: control target
= control target key end

     0   :  { %11 = vsyncpa [#allocation3], 0  ;;  %s1567_s0 = inlined_call_operand.hbm [shape: f32[16,16,32], index: 0, kind: input, shape index: {}]   ;;  %s1568_s1 = inlined_call_operand.vmem [shape: s32[16,1], index: 1, kind: input, shape index: {}]   ;;  %s1569_s2 = inlined_call_operand.hbm [shape: f32[32,128], index: 2, kind: input, shape index: {}]   ;;  %s1570_s3 = inlined_call_operand.vmem [shape: f32[1,128], index: 3, kind: input, shape index: {}]   ;;  %s1571_s4 = inlined_call_operand.hbm [shape: f32[128,128], index: 4, kind: input, shape index: {}]   ;;  %s1572_s5 = inlined_call_operand.vmem [shape: f32[1,128], index: 5, kind: input, shape index: {}]   ;;  %s1573_s6 = inlined_call_operand.hbm [shape: f32[16,128], index: 6, kind: output, shape index: {}]  }
   0x1   :  { %13 = vsyncpa [#allocation3 + $0x1], 0 }
   0x2   :  { %14 = vsyncpa [#allocation6], 0 }
   0x3   :  { %15 = vsyncpa [#allocation4], 0 }
   0x4   :  { %17 = vsyncpa [#allocation4 + $0x1], 0  ;;  %s1164_s21 = smov 0   ;;  %s1166_s22 = smov 0  }
   0x5   :  { %s1168_s23 = smov 0   ;;  %s1170_s24 = smov 0  }
   0x6 LB: > { %s1185_s25 = sadd.s32 4294967295, %s1122_s24   ;;  %s847_s26 = sadd.s32 4294967294, %s1122_s24   ;;  %s1122_s24 = sphi %s1170_s24, %s1603_s24   ;;  %s1118_s23 = sphi %s1168_s23, %s1602_s23   ;;  %s1114_s22 = sphi %s1166_s22, %s1601_s22   ;;  %s1110_s21 = sphi %s1164_s21, %s1600_s21  }
   0x7   : > { %p43_p0 = scmp.ne.s32.totalorder %s1114_s22, %s1110_s21  ;;  %p44_p1 = scmp.eq.s32.totalorder %s1185_s25, 0 }
   0x8   : > { %p177_p2 = scmp.eq.s32.totalorder %s1185_s25, 1  ;;  %p183_p3 = scmp.eq.s32.totalorder %s847_s26, 1 }
   0x9   : > { %p1194_p4 = por %p44_p1, %p43_p0  ;;  %p848_p5 = scmp.ge.s32.totalorder %s1122_s24, 1 }
   0xa   : > { %p1199_p6 = por %p183_p3, %p43_p0  ;;  %p190_p7 = scmp.lt.s32.totalorder %s1122_s24, 3 }
   0xb   : > { %s201_s7 = sshll.u32 %s1569_s2, 4  ;;  %s1124_s9 = smov [#allocation5]   ;;  %s202_s7 = int_to_ptr.hbm [resolvable:$true] %s201_s7 }
   0xc   : > { %p1207_p8 = pnand %p848_p5, %p190_p7  ;;  %s203_s10 = sshll.u32 %s1124_s9, 4  ;;  %s204_s10 = int_to_ptr.vmem [resolvable:$true] %s203_s10 }
   0xd   : > { %s218_s13 = sshll.u32 %s1571_s4, 4  ;;  %s1574_s14 = smov 128   ;;  %s219_s13 = int_to_ptr.hbm [resolvable:$true] %s218_s13 }
   0xe   : > { %p881_p9 = pneg %p1207_p8  ;;  %s1575_s15 = smov 8  }
   0xf   : > { %s1127_s16 = smov [#allocation7]   ;;  %s1226_s18 = sadd.s32 1, %s1122_s24  }
  0x10   : > { %p882_p10 = pnand %p881_p9, %p44_p1  ;;  %s220_s17 = sshll.u32 %s1127_s16, 4  ;;  %s221_s17 = int_to_ptr.vmem [resolvable:$true] %s220_s17 }
  0x11   : > { %s30_s19 = sadd.s32 1, %s1118_s23  ;;  %s27_s20 = ssub.s32 %s1122_s24, %s1226_s18 }
  0x12   : > { %884 = dma.hbm_to_vmem [thread:$0]  (!%p882_p10), %s202_s7, 512, %s204_s10, [#allocation6], %s1574_s14, %s1574_s14, %s1575_s15  }
  0x13   : > { %887 = dma.hbm_to_vmem [thread:$0]  (!%p882_p10), %s219_s13, 2048, %s221_s17, [#allocation6], %s1574_s14, %s1574_s14, %s1575_s15  }
  0x14   : > { %p37_p12 = scmp.ne.s32.totalorder %s1118_s23, %s1114_s22  ;;  %p28_p13 = scmp.eq.s32.totalorder %s27_s20, 0 }
  0x15   : > { %p38_p0 = scmp.eq.s32.totalorder %s1122_s24, 0  ;;  %p898_p5 = scmp.lt.s32.totalorder %s1122_s24, 2 }
  0x16   : > { %p1236_p3 = por %p177_p2, %p37_p12  ;;  %s237_s30 = sand.u32 1, %s1118_s23  }
  0x17   : > { %s1242_s29 = scalar_select %p28_p13, %s1118_s23, %s30_s19  }
  0x18   : > { %p39_p7 = por %p38_p0, %p37_p12  ;;  %s852_s7 = sshll.u32 %s237_s30, 7 }
  0x19   : > { %s868_s9 = sshll.u32 %s1122_s24, 7  ;;  %s241_s13 = scalar_lea.vmem [#allocation2], %s852_s7 }
  0x1a   : > { %s247_s12 = scalar_lea.hbm %s1567_s0, %s868_s9  ;;  %s250_s16 = sshll.u32 %s241_s13, 4  ;;  %s251_s16 = int_to_ptr.vmem [resolvable:$true] %s250_s16 }
  0x1b   : > { %s248_s17 = sshll.u32 %s247_s12, 4  ;;  %p1249_p2 = pnand %p898_p5, %p39_p7  ;;  %s249_s17 = int_to_ptr.hbm [resolvable:$true] %s248_s17 }
  0x1c   : > { %s238_s19 = scalar_lea.sflag [#allocation3], %s237_s30  ;;  %s1022_s14 = sshra.s32 %s249_s17, 4  ;;  %s1023_s14 = int_to_ptr.hbm [resolvable:$true] %s1022_s14 }
  0x1d   : > { %s1024_s15 = scalar_lea.hbm %s1023_s14, 128  ;;  %p1026_p10 = pneg %p1249_p2 }
  0x1e   : > { %p1025_p9 = scmp.ne.s32.totalorder %s1023_s14, %s1024_s15  ;;  %s1029_s10 = scalar_lea.hbm %s1567_s0, 256 }
  0x1f   : > { %p1030_p0 = scmp.lt.s32.totalorder %s1023_s14, %s1567_s0  ;;  %p1031_p5 = scmp.lt.s32.totalorder %s1029_s10, %s1024_s15 }
  0x20   : > { %p1027_p12 = pnand %p1026_p10, %p1025_p9 }
  0x21   : > { %p1032_p7 = por %p1031_p5, %p1030_p0 }
  0x22   : > { %p1028_p13 = pneg %p1027_p12 }
  0x24   : > { %p1033_p11 = pnand %p1032_p7, %p1028_p13 }
  0x26   : > { %1036 = shalt.err (!%p1033_p11)
}
  0x27   : > { %s1581_s30 = smov 8   ;;  %s1582_s13 = smov 128  }
  0x28   : > { %891 = dma.hbm_to_vmem [thread:$0]  (!%p1249_p2), %s249_s17, 2048, %s251_s16, %s238_s19, %s1582_s13, %s1582_s13, %s1581_s30  }
  0x29   : > { %269 = sbr.rel (%p1207_p8) target bundleno = 497 (0x1f1), region = 44  ;;  %s1269_s9 = sand.u32 (!%p1207_p8), 1, %s1114_s22  }
  0x2a   : > { %s857_s14 = sshll.u32 (!%p1207_p8), %s1269_s9, 7  ;;  %s272_s15 = scalar_lea.sflag (!%p1207_p8), [#allocation3], %s1269_s9 }
  0x2b   : > { %s1273_s7 = scalar_lea.vmem (!%p1207_p8), [#allocation2], %s857_s14 }
  0x2e   : > { %1097 = dma.done.wait (%p1194_p4), %s272_s15, 2048  }
  0x2f   : > { %1099 = vsyncadd (%p1194_p4), %s272_s15, 4294965248 }
  0x30   : > { %1101 = dma.done.wait (%p44_p1), [#allocation6], 2560  }
  0x31   : > { %1103 = vsyncadd (%p44_p1), [#allocation6], 4294964736  ;;  %p320_p8 = scmp.lt.s32.totalorder %s1185_s25, 1  ;;  %v1128_v0 = vmov 0   ;;  %v325_v19 = vlaneseq  ;;  %v389_v22 = vld [vmem:[%s1273_s7 + $0x30] sm:$0xff]  ;;  %v390_v23 = vld [vmem:[%s1273_s7 + $0x38] sm:$0xff] }
  0x32   : > { %939 = vset.pattern.permute.xlu1 %v1128_v0  ;;  %940 = vset.pattern.permute.xlu0 %v1128_v0  ;;  %vm415_vm0 = vcmask 261120   ;;  %v391_v30 = vld [vmem:[%s1273_s7 + $0x40] sm:$0xff]  ;;  %v392_v31 = vld [vmem:[%s1273_s7 + $0x48] sm:$0xff]  ;;  %v397_v41 = vld [vmem:[%s1273_s7 + $0x70] sm:$0xff]  ;;  %s860_s11 = sshll.u32 %s1269_s9, 3  ;;  %s864_s12 = sshll.u32 %s1185_s25, 3 }
  0x33   : > { %s321_s8 = scalar_select %p320_p8, %s1185_s25, 1  ;;  %941 = vset.pattern.permute.xlu2 %v1128_v0  ;;  %v1288_v20 = vshrl.u32 %v325_v19, 7  ;;  %v398_v42 = vld [vmem:[%s1273_s7 + $0x78] sm:$0xff]  ;;  %v383_v53 = vld [vmem:[%s1273_s7] sm:$0xff]  ;;  %v384_v54 = vld [vmem:[%s1273_s7 + $0x8] sm:$0xff] }
  0x34   : > { %s741_s14 = scalar_lea.hbm %s1573_s6, %s864_s12  ;;  %s731_s20 = scalar_lea.sflag [#allocation4], %s1269_s9 }
  0x35   : > { %s861_s16 = sshll.u32 %s321_s8, 3  ;;  %v1291_v21 = vadd.s32 8, %v1288_v20  ;;  %s318_s8 = scalar_lea.vmem [#allocation8], %s860_s11 }
  0x36   : > { %s323_s27 = scalar_lea.vmem %s1568_s1, %s861_s16  ;;  %s743_s16 = sshll.u32 %s318_s8, 4  ;;  %s744_s16 = int_to_ptr.vmem [resolvable:$true] %s743_s16 }
  0x37   : > { %v324_v1 = vld [vmem:[%s323_s27] sm:$0xff]  ;;  %s745_s17 = sshll.u32 %s741_s14, 4  ;;  %s1072_s12 = scalar_lea.hbm %s1573_s6, 16  ;;  %s746_s17 = int_to_ptr.hbm [resolvable:$true] %s745_s17 }
  0x38   : > { %v335_v2 = vperm.slane %v324_v1, 0  ;;  %v488_v3 = vcvt.s32.f32 %v324_v1  ;;  %v330_v4 = vrot.slane %v324_v1, 3  ;;  %v329_v7 = vrot.slane %v324_v1, 2  ;;  %s1066_s27 = sshra.s32 %s746_s17, 4  ;;  %s1067_s27 = int_to_ptr.hbm [resolvable:$true] %s1066_s27 }
  0x39   : > { %v328_v8 = vrot.slane %v324_v1, 1  ;;  %v331_v9 = vrot.slane %v324_v1, 4  ;;  %v333_v13 = vrot.slane %v324_v1, 6  ;;  %v332_v14 = vrot.slane %v324_v1, 5  ;;  %s1068_s25 = scalar_lea.hbm %s1067_s27, 8  ;;  %p1073_p2 = scmp.lt.s32.totalorder %s1067_s27, %s1573_s6 }
  0x3a   : > { %344 = vperm.xlu1 %939, %v335_v2   ;;  %v489_v5 = vmax.f32 %v488_v3, 1.0  ;;  %v338_v6 = vperm.slane %v330_v4, 0  ;;  %v337_v10 = vperm.slane %v329_v7, 0  ;;  %v334_v15 = vrot.slane %v324_v1, 7  ;;  %p1069_p1 = scmp.ne.s32.totalorder %s1067_s27, %s1068_s25  ;;  %p1074_p9 = scmp.lt.s32.totalorder %s1072_s12, %s1068_s25 }
  0x3b   : > { %v336_v11 = vperm.slane %v328_v8, 0  ;;  %v339_v12 = vperm.slane %v331_v9, 0  ;;  %v341_v16 = vperm.slane %v333_v13, 0  ;;  %v340_v17 = vperm.slane %v332_v14, 0  ;;  %v387_v8 = vld [vmem:[%s1273_s7 + $0x20] sm:$0xff]  ;;  %v388_v9 = vld [vmem:[%s1273_s7 + $0x28] sm:$0xff] }
  0x3c   : > { %492 = vperm.xlu0 %940, %v489_v5   ;;  %353 = vperm.xlu2 %941, %v338_v6   ;;  %v342_v18 = vperm.slane %v334_v15, 0  ;;  %v632_v5 = vld [vmem:[#allocation5 + $0x18] sm:$0xff]  ;;  %v631_v6 = vld [vmem:[#allocation5 + $0x10] sm:$0xff]  ;;  %p1070_p4 = pnand %p1069_p1, %p1236_p3  ;;  %p1075_p10 = por %p1074_p9, %p1073_p2 }
  0x3d   : > { %680 = vmatpush.msra.mxu0 %v632_v5 }
  0x3e   : > { %p1071_p11 = pneg %p1070_p4 }
  0x3f   : > { %681 = vmatpush.msra.mxu0 %v631_v6 }
  0x40   : > { %p1076_p12 = pnand %p1075_p10, %p1071_p11 }
  0x42   : > { %350 = vperm.xlu1 %939, %v337_v10   ;;  %v630_v10 = vld [vmem:[#allocation5 + $0x8] sm:$0xff] }
  0x43   : > { %682 = vmatpush.msra.mxu0 %v630_v10 }
  0x44   : > { %347 = vperm.xlu0 %940, %v336_v11   ;;  %356 = vperm.xlu2 %941, %v339_v12  }
  0x4a   : > { %362 = vperm.xlu1 %939, %v341_v16   ;;  %v629_v16 = vld [vmem:[#allocation5] sm:$0xff] }
  0x4b   : > { %683 = vmatpush.msra.mxu0 %v629_v16 }
  0x4c   : > { %359 = vperm.xlu0 %940, %v340_v17   ;;  %365 = vperm.xlu2 %941, %v342_v18  }
  0x96   : > { %v354_v24 = vpop.permute.xlu2 %353 }
  0x97   : > { %vm373_vm1 = vcmp.lt.s32.totalorder %v1288_v20, %v354_v24  ;;  %vm374_vm2 = vcmp.lt.s32.totalorder %v1291_v21, %v354_v24 }
  0x98   : > { %v405_v25 = vsel %vm373_vm1, %v389_v22, 0.0  ;;  %v406_v26 = vsel %vm374_vm2, %v390_v23, 0.0  ;;  %v385_v22 = vld [vmem:[%s1273_s7 + $0x10] sm:$0xff]  ;;  %v386_v23 = vld [vmem:[%s1273_s7 + $0x18] sm:$0xff] }
  0x99   : > { %v443_v27 = vsel %vm415_vm0, %v405_v25, 0.0  ;;  %v444_v28 = vsel %vm415_vm0, %v406_v26, 0.0 }
  0x9a   : > { %v445_v29 = vadd.f32 %v444_v28, %v443_v27 }
  0x9c   : > { %v446_v33 = vrot.slane %v445_v29, 4 }
  0x9e   : > { %v357_v32 = vpop.permute.xlu2 %356  ;;  %v447_v39 = vadd.f32 %v446_v33, %v445_v29 }
  0x9f   : > { %vm375_vm3 = vcmp.lt.s32.totalorder %v1288_v20, %v357_v32  ;;  %vm376_vm4 = vcmp.lt.s32.totalorder %v1291_v21, %v357_v32 }
  0xa0   : > { %v407_v34 = vsel %vm375_vm3, %v391_v30, 0.0  ;;  %v408_v35 = vsel %vm376_vm4, %v392_v31, 0.0  ;;  %v448_v45 = vrot.slane %v447_v39, 2 }
  0xa1   : > { %v452_v36 = vsel %vm415_vm0, %v407_v34, 0.0  ;;  %v453_v37 = vsel %vm415_vm0, %v408_v35, 0.0 }
  0xa2   : > { %v454_v38 = vadd.f32 %v453_v37, %v452_v36  ;;  %v449_v52 = vadd.f32 %v448_v45, %v447_v39 }
  0xa4   : > { %v455_v40 = vrot.slane %v454_v38, 4  ;;  %v450_v61 = vrot.slane %v449_v52, 1 }
  0xa6   : > { %v456_v43 = vadd.f32 %v455_v40, %v454_v38  ;;  %v366_v44 = vpop.permute.xlu2 %365  ;;  %v1329_v11 = vadd.f32 %v450_v61, %v449_v52 }
  0xa7   : > { %vm381_vm5 = vcmp.lt.s32.totalorder %v1288_v20, %v366_v44  ;;  %vm382_vm6 = vcmp.lt.s32.totalorder %v1291_v21, %v366_v44 }
  0xa8   : > { %v457_v46 = vrot.slane %v456_v43, 2  ;;  %v413_v47 = vsel %vm381_vm5, %v397_v41, 0.0  ;;  %v414_v48 = vsel %vm382_vm6, %v398_v42, 0.0 }
  0xa9   : > { %v479_v49 = vsel %vm415_vm0, %v413_v47, 0.0  ;;  %v480_v50 = vsel %vm415_vm0, %v414_v48, 0.0  ;;  %v395_v47 = vld [vmem:[%s1273_s7 + $0x60] sm:$0xff] }
  0xaa   : > { %v481_v51 = vadd.f32 %v480_v50, %v479_v49  ;;  %v458_v55 = vadd.f32 %v457_v46, %v456_v43 }
  0xac   : > { %v482_v56 = vrot.slane %v481_v51, 4  ;;  %v345_v57 = vpop.permute.xlu1 %344  ;;  %v459_v1 = vrot.slane %v458_v55, 1 }
  0xad   : > { %vm367_vm7 = vcmp.lt.s32.totalorder %v1288_v20, %v345_v57  ;;  %vm368_vm8 = vcmp.lt.s32.totalorder %v1291_v21, %v345_v57 }
  0xae   : > { %v399_v58 = vsel %vm367_vm7, %v383_v53, 0.0  ;;  %v400_v59 = vsel %vm368_vm8, %v384_v54, 0.0  ;;  %v1315_v60 = vpop.permute.xlu0 %492  ;;  %v483_v2 = vadd.f32 %v482_v56, %v481_v51  ;;  %v1331_v12 = vadd.f32 %v459_v1, %v458_v55  ;;  %v396_v51 = vld [vmem:[%s1273_s7 + $0x68] sm:$0xff] }
  0xaf   : > { %v416_v62 = vsel %vm415_vm0, %v399_v58, 0.0  ;;  %v417_v63 = vsel %vm415_vm0, %v400_v59, 0.0  ;;  %v1320_v0 = vrot.slane %v1315_v60, 2  ;;  %v1323_v4 = vrot.slane %v1315_v60, 1 }
  0xb0   : > { %v418_v3 = vadd.f32 %v417_v63, %v416_v62  ;;  %v484_v13 = vrot.slane %v483_v2, 2  ;;  %v1340_v25 = vrot.slane %v1315_v60, 3  ;;  %v393_v62 = vld [vmem:[%s1273_s7 + $0x50] sm:$0xff] }
  0xb1   : > { %944 = vrcp.f32 %v1320_v0  ;;  %v550_v15 = vand.u32 2147483648, %v1320_v0  ;;  %vm544_vm13 = vweird.f32 %v1320_v0  ;;  %v548_v32 = vand.u32 2147483647, %v1320_v0 }
  0xb2   : > { %v419_v7 = vrot.slane %v418_v3, 4  ;;  %946 = vrcp.f32 %v1323_v4  ;;  %v1350_v30 = vadd.f32 %v484_v13, %v483_v2  ;;  %vm529_vm14 = vweird.f32 %v1323_v4 }
  0xb3   : > { %948 = vrcp.f32 %v1315_v60  ;;  %v1356_v34 = vor.u32 1.1754944e-38, %v550_v15  ;;  %v533_v40 = vand.u32 2147483647, %v1323_v4  ;;  %v535_v45 = vand.u32 2147483648, %v1323_v4 }
  0xb4   : > { %v351_v14 = vpop.permute.xlu1 %350  ;;  %v420_v17 = vadd.f32 %v419_v7, %v418_v3  ;;  %vm1381_vm5 = vcmp.eq.f32.partialorder %v548_v32, 8.507059e+37  ;;  %v394_v7 = vld [vmem:[%s1273_s7 + $0x58] sm:$0xff]  ;;  %v1398_v13 = vrot.slane %v1315_v60, 4  ;;  %950 = vrcp.f32 %v1340_v25 }
  0xb5   : > { %vm371_vm9 = vcmp.lt.s32.totalorder %v1288_v20, %v351_v14  ;;  %vm372_vm10 = vcmp.lt.s32.totalorder %v1291_v21, %v351_v14 }
  0xb6   : > { %v403_v18 = vsel %vm371_vm9, %v387_v8, 0.0  ;;  %v404_v19 = vsel %vm372_vm10, %v388_v9, 0.0  ;;  %v348_v24 = vpop.permute.xlu0 %347  ;;  %v421_v43 = vrot.slane %v420_v17, 2  ;;  %vm514_vm10 = vweird.f32 %v1315_v60 }
  0xb7   : > { %v1342_v26 = vpop.eup %944  ;;  %v434_v27 = vsel %vm415_vm0, %v403_v18, 0.0  ;;  %v435_v28 = vsel %vm415_vm0, %v404_v19, 0.0  ;;  %vm369_vm11 = vcmp.lt.s32.totalorder %v1288_v20, %v348_v24  ;;  %vm370_vm12 = vcmp.lt.s32.totalorder %v1291_v21, %v348_v24 }
  0xb8   : > { %v1348_v29 = vpop.eup %946  ;;  %v540_v31 = vmul.f32 %v1342_v26, %v1320_v0  ;;  %v436_v33 = vadd.f32 %v435_v28, %v434_v27  ;;  %v401_v36 = vsel %vm369_vm11, %v385_v22, 0.0  ;;  %v402_v37 = vsel %vm370_vm12, %v386_v23, 0.0  ;;  %v699_v0 = vld [vmem:[#allocation7 + $0x50] sm:$0xff] }
  0xb9   : > { %v525_v35 = vmul.f32 %v1348_v29, %v1323_v4  ;;  %v425_v41 = vsel %vm415_vm0, %v401_v36, 0.0  ;;  %v1363_v42 = vpop.eup %948  ;;  %v426_v46 = vsel %vm415_vm0, %v402_v37, 0.0  ;;  %vm545_vm15 = vweird.f32 %v1342_v26 }
  0xba   : > { %v541_v38 = vsub.f32 1.0, %v540_v31  ;;  %v437_v39 = vrot.slane %v436_v33, 4  ;;  %v427_v50 = vadd.f32 %v426_v46, %v425_v41  ;;  %vm530_vm1 = vweird.f32 %v1348_v29  ;;  %vm1392_vm6 = vmor %vm544_vm13, %vm545_vm15 }
  0xbb   : > { %v526_v44 = vsub.f32 1.0, %v525_v35  ;;  %v510_v63 = vmul.f32 %v1363_v42, %v1315_v60  ;;  %v422_v8 = vadd.f32 %v421_v43, %v420_v17  ;;  %vm1409_vm8 = vmor %vm529_vm14, %vm530_vm1  ;;  %vm515_vm9 = vweird.f32 %v1363_v42 }
  0xbc   : > { %v542_v48 = vmul.f32 %v1342_v26, %v541_v38  ;;  %v438_v49 = vadd.f32 %v437_v39, %v436_v33  ;;  %v363_v52 = vpop.permute.xlu1 %362  ;;  %v428_v56 = vrot.slane %v427_v50, 4  ;;  %v518_v33 = vand.u32 2147483647, %v1315_v60  ;;  %vm1430_vm12 = vmor %vm514_vm10, %vm515_vm9 }
  0xbd   : > { %v527_v53 = vmul.f32 %v1348_v29, %v526_v44  ;;  %vm379_vm2 = vcmp.lt.s32.totalorder %v1288_v20, %v363_v52  ;;  %vm380_vm3 = vcmp.lt.s32.totalorder %v1291_v21, %v363_v52  ;;  %v511_v22 = vsub.f32 1.0, %v510_v63  ;;  %v701_v63 = vld [vmem:[#allocation7 + $0x60] sm:$0xff] }
  0xbe   : > { %v543_v54 = vadd.f32 %v1342_v26, %v542_v48  ;;  %v439_v55 = vrot.slane %v438_v49, 2  ;;  %v411_v57 = vsel %vm379_vm2, %v395_v47, 0.0  ;;  %v360_v58 = vpop.permute.xlu0 %359  ;;  %v412_v59 = vsel %vm380_vm3, %v396_v51, 0.0 }
  0xbf   : > { %v470_v61 = vsel %vm415_vm0, %v411_v57, 0.0  ;;  %vm377_vm4 = vcmp.lt.s32.totalorder %v1288_v20, %v360_v58  ;;  %v528_v3 = vadd.f32 %v1348_v29, %v527_v53  ;;  %v429_v5 = vadd.f32 %v428_v56, %v427_v50  ;;  %v951_v57 = vpop.eup %950 }
  0xc0   : > { %v440_v2 = vadd.f32 %v439_v55, %v438_v49  ;;  %v471_v6 = vsel %vm415_vm0, %v412_v59, 0.0  ;;  %vm378_vm7 = vcmp.lt.s32.totalorder %v1291_v21, %v360_v58  ;;  %v547_v14 = vsel %vm1392_vm6, %v1342_v26, %v543_v54 }
  0xc1   : > { %v472_v10 = vadd.f32 %v471_v6, %v470_v61  ;;  %v430_v16 = vrot.slane %v429_v5, 2  ;;  %v409_v17 = vsel %vm377_vm4, %v393_v62, 0.0  ;;  %v410_v18 = vsel %vm378_vm7, %v394_v7, 0.0 }
  0xc2   : > { %v441_v15 = vrot.slane %v440_v2, 1  ;;  %v461_v19 = vsel %vm415_vm0, %v409_v17, 0.0  ;;  %v532_v24 = vsel %vm1409_vm8, %v1348_v29, %v528_v3  ;;  %v462_v26 = vsel %vm415_vm0, %v410_v18, 0.0 }
  0xc3   : > { %v473_v21 = vrot.slane %v472_v10, 4  ;;  %v431_v20 = vadd.f32 %v430_v16, %v429_v5  ;;  %v463_v28 = vadd.f32 %v462_v26, %v461_v19  ;;  %v512_v31 = vmul.f32 %v1363_v42, %v511_v22 }
  0xc4   : > { %v442_v23 = vadd.f32 %v441_v15, %v440_v2  ;;  %v520_v35 = vand.u32 2147483648, %v1315_v60  ;;  %vm534_vm11 = vcmp.eq.f32.partialorder %v533_v40, 8.507059e+37  ;;  %v536_v38 = vor.u32 1.1754944e-38, %v535_v45  ;;  %v704_v40 = vld [vmem:[#allocation7 + $0x78] sm:$0xff]  ;;  %v703_v45 = vld [vmem:[#allocation7 + $0x70] sm:$0xff] }
  0xc5   : > { %v474_v27 = vadd.f32 %v473_v21, %v472_v10  ;;  %v432_v32 = vrot.slane %v431_v20, 1  ;;  %v464_v37 = vrot.slane %v463_v28, 4  ;;  %v513_v29 = vadd.f32 %v1363_v42, %v512_v31  ;;  %709 = vmatpush.msra.mxu1 %v704_v40 }
  0xc6   : > { %v1428_v41 = vrot.slane %v1315_v60, 5  ;;  %v423_v44 = vrot.slane %v422_v8, 1  ;;  %v552_v46 = vsel %vm1381_vm5, %v1356_v34, %v547_v14  ;;  %v537_v49 = vsel %vm534_vm11, %v536_v38, %v532_v24  ;;  %v702_v34 = vld [vmem:[#allocation7 + $0x68] sm:$0xff] }
  0xc7   : > { %v475_v36 = vrot.slane %v474_v27, 2  ;;  %v433_v39 = vadd.f32 %v432_v32, %v431_v20  ;;  %v465_v47 = vadd.f32 %v464_v37, %v463_v28  ;;  %v517_v4 = vsel %vm1430_vm12, %v1363_v42, %v513_v29  ;;  %710 = vmatpush.msra.mxu1 %v703_v45  ;;  %v698_v24 = vld [vmem:[#allocation7 + $0x48] sm:$0xff]  ;;  %v697_v37 = vld [vmem:[#allocation7 + $0x40] sm:$0xff] }
  0xc8   : > { %v1440_v48 = vmul.f32 %v552_v46, %v442_v23  ;;  %v521_v51 = vor.u32 1.1754944e-38, %v520_v35  ;;  %vm519_vm13 = vcmp.eq.f32.partialorder %v518_v33, 8.507059e+37  ;;  %952 = vrcp.f32 %v1398_v13  ;;  %v943_v35 = vld [vmem:[%s1572_s5] ss:$0 sm:$0xff] }
  0xc9   : > { %v476_v50 = vadd.f32 %v475_v36, %v474_v27  ;;  %v1442_v52 = vmul.f32 %v537_v49, %v433_v39  ;;  %v466_v53 = vrot.slane %v465_v47, 2  ;;  %v486_v54 = vrot.slane %v1350_v30, 1  ;;  %711 = vmatpush.msra.mxu1 %v702_v34 }
  0xca   : > { %v1447_v55 = vrot.slane %v1315_v60, 6  ;;  %v522_v42 = vsel %vm519_vm13, %v521_v51, %v517_v4  ;;  %v563_v56 = vand.u32 2147483647, %v1340_v25  ;;  %v424_v58 = vadd.f32 %v423_v44, %v422_v8 }
  0xcb   : > { %v467_v59 = vadd.f32 %v466_v53, %v465_v47  ;;  %v1451_v61 = vrot.slane %v1315_v60, 7  ;;  %v565_v62 = vand.u32 2147483648, %v1340_v25  ;;  %v648_v1 = vrot.slane %v1440_v48, 6  ;;  %v700_v60 = vld [vmem:[#allocation7 + $0x58] sm:$0xff]  ;;  %712 = vmatpush.msra.mxu1 %v701_v63  ;;  %v695_v53 = vld [vmem:[#allocation7 + $0x30] sm:$0xff] }
  0xcc   : > { %v477_v2 = vrot.slane %v476_v50, 1  ;;  %v555_v3 = vmul.f32 %v951_v57, %v1340_v25  ;;  %954 = vrcp.f32 %v1428_v41  ;;  %v645_v5 = vrot.slane %v1442_v52, 7  ;;  %v696_v47 = vld [vmem:[#allocation7 + $0x38] sm:$0xff] }
  0xcd   : > { %v523_v6 = vmul.f32 %v522_v42, %v424_v58  ;;  %vm559_vm14 = vweird.f32 %v1340_v25  ;;  %v578_v7 = vand.u32 2147483647, %v1398_v13  ;;  %vm1460_vm15 = vcmp.eq.f32.partialorder %v563_v56, 8.507059e+37  ;;  %713 = vmatpush.msra.mxu1 %v700_v60 }
  0xce   : > { %v556_v8 = vsub.f32 1.0, %v555_v3  ;;  %v580_v10 = vand.u32 2147483648, %v1398_v13  ;;  %956 = vrcp.f32 %v1447_v55  ;;  %v953_v14 = vpop.eup %952  ;;  %v468_v15 = vrot.slane %v467_v59, 1 }
  0xcf   : > { %v566_v16 = vor.u32 1.1754944e-38, %v565_v62  ;;  %vm574_vm1 = vweird.f32 %v1398_v13  ;;  %v593_v17 = vand.u32 2147483647, %v1428_v41  ;;  %v1468_v21 = vadd.f32 %v477_v2, %v476_v50  ;;  %714 = vmatpush.msra.mxu1 %v699_v0 }
  0xd0   : > { %v557_v18 = vmul.f32 %v951_v57, %v556_v8  ;;  %vm560_vm2 = vweird.f32 %v951_v57  ;;  %v570_v19 = vmul.f32 %v953_v14, %v1398_v13  ;;  %vm1471_vm3 = vcmp.eq.f32.partialorder %v578_v7, 8.507059e+37  ;;  %v694_v13 = vld [vmem:[#allocation7 + $0x28] sm:$0xff] }
  0xd1   : > { %vm589_vm4 = vweird.f32 %v1428_v41  ;;  %v595_v23 = vand.u32 2147483648, %v1428_v41  ;;  %958 = vrcp.f32 %v1451_v61  ;;  %v581_v28 = vor.u32 1.1754944e-38, %v580_v10  ;;  %vm561_vm5 = vmor %vm559_vm14, %vm560_vm2  ;;  %715 = vmatpush.msra.mxu1 %v698_v24 }
  0xd2   : > { %v955_v20 = vpop.eup %954  ;;  %v558_v26 = vadd.f32 %v951_v57, %v557_v18  ;;  %v571_v27 = vsub.f32 1.0, %v570_v19  ;;  %v608_v31 = vand.u32 2147483647, %v1447_v55  ;;  %v469_v32 = vadd.f32 %v468_v15, %v467_v59 }
  0xd3   : > { %v585_v33 = vmul.f32 %v955_v20, %v1428_v41  ;;  %vm1483_vm6 = vcmp.eq.f32.partialorder %v593_v17, 8.507059e+37  ;;  %vm604_vm7 = vweird.f32 %v1447_v55  ;;  %v610_v36 = vand.u32 2147483648, %v1447_v55  ;;  %716 = vmatpush.msra.mxu1 %v697_v37 }
  0xd4   : > { %v957_v29 = vpop.eup %956  ;;  %v562_v38 = vsel %vm561_vm5, %v951_v57, %v558_v26  ;;  %v572_v39 = vmul.f32 %v953_v14, %v571_v27  ;;  %vm575_vm8 = vweird.f32 %v953_v14  ;;  %vm646_vm9 = vcmask 1041409   ;;  %v689_v27 = vld [vmem:[#allocation7] sm:$0xff] }
  0xd5   : > { %v567_v25 = vsel %vm1460_vm15, %v566_v16, %v562_v38  ;;  %v586_v43 = vsub.f32 1.0, %v585_v33  ;;  %v596_v44 = vor.u32 1.1754944e-38, %v595_v23  ;;  %v600_v46 = vmul.f32 %v957_v29, %v1447_v55  ;;  %vm576_vm13 = vmor %vm574_vm1, %vm575_vm8  ;;  %717 = vmatpush.msra.mxu1 %v696_v47 }
  0xd6   : > { %v573_v4 = vadd.f32 %v953_v14, %v572_v39  ;;  %vm590_vm10 = vweird.f32 %v955_v20  ;;  %vm1492_vm11 = vcmp.eq.f32.partialorder %v608_v31, 8.507059e+37  ;;  %vm649_vm12 = vcmask 1042434  }
  0xd7   : > { %v959_v45 = vpop.eup %958  ;;  %v568_v49 = vmul.f32 %v567_v25, %v1329_v11  ;;  %v587_v50 = vmul.f32 %v955_v20, %v586_v43  ;;  %v601_v51 = vsub.f32 1.0, %v600_v46  ;;  %v647_v52 = vsel %vm646_vm9, %v645_v5, %v523_v6  ;;  %vm591_vm1 = vmor %vm589_vm4, %vm590_vm10  ;;  %718 = vmatpush.msra.mxu1 %v695_v53 }
  0xd8   : > { %v577_v34 = vsel %vm576_vm13, %v953_v14, %v573_v4  ;;  %v611_v42 = vor.u32 1.1754944e-38, %v610_v36  ;;  %v615_v56 = vmul.f32 %v959_v45, %v1451_v61  ;;  %vm619_vm14 = vweird.f32 %v1451_v61 }
  0xd9   : > { %v582_v57 = vsel %vm1471_vm3, %v581_v28, %v577_v34  ;;  %v588_v11 = vadd.f32 %v955_v20, %v587_v50  ;;  %v602_v58 = vmul.f32 %v957_v29, %v601_v51  ;;  %vm605_vm15 = vweird.f32 %v957_v29  ;;  %719 = vmatpush.msra.mxu1 %v694_v13  ;;  %v942_v28 = vld [vmem:[%s1570_s3] ss:$0 sm:$0xff] }
  0xda   : > { %v583_v59 = vmul.f32 %v582_v57, %v1331_v12  ;;  %v616_v62 = vsub.f32 1.0, %v615_v56  ;;  %v650_v63 = vsel %vm649_vm12, %v648_v1, %v647_v52  ;;  %vm652_vm2 = vcmask 1043459   ;;  %vm606_vm3 = vmor %vm604_vm7, %vm605_vm15 }
  0xdb   : > { %v592_v2 = vsel %vm591_vm1, %v955_v20, %v588_v11  ;;  %v603_v3 = vadd.f32 %v957_v29, %v602_v58  ;;  %v625_v5 = vand.u32 2147483648, %v1451_v61  ;;  %v651_v6 = vrot.slane %v568_v49, 5 }
  0xdc   : > { %v597_v7 = vsel %vm1483_vm6, %v596_v44, %v592_v2  ;;  %v617_v12 = vmul.f32 %v959_v45, %v616_v62  ;;  %vm620_vm4 = vweird.f32 %v959_v45  ;;  %v623_v41 = vand.u32 2147483647, %v1451_v61  ;;  %v691_v61 = vld [vmem:[#allocation7 + $0x10] sm:$0xff] }
  0xdd   : > { %v598_v48 = vmul.f32 %v597_v7, %v469_v32  ;;  %v607_v1 = vsel %vm606_vm3, %v957_v29, %v603_v3  ;;  %v653_v60 = vsel %vm652_vm2, %v651_v6, %v650_v63  ;;  %vm655_vm5 = vcmask 1044484   ;;  %vm621_vm6 = vmor %vm619_vm14, %vm620_vm4 }
  0xde   : > { %v612_v8 = vsel %vm1492_vm11, %v611_v42, %v607_v1  ;;  %v618_v9 = vadd.f32 %v959_v45, %v617_v12  ;;  %v654_v10 = vrot.slane %v583_v59, 4  ;;  %vm658_vm8 = vcmask 1045509  }
  0xdf   : > { %v487_v55 = vadd.f32 %v486_v54, %v1350_v30  ;;  %v613_v14 = vmul.f32 %v612_v8, %v1468_v21  ;;  %v626_v15 = vor.u32 1.1754944e-38, %v625_v5  ;;  %v657_v16 = vrot.slane %v598_v48, 3  ;;  %v693_v30 = vld [vmem:[#allocation7 + $0x20] sm:$0xff]  ;;  %v692_v54 = vld [vmem:[#allocation7 + $0x18] sm:$0xff]  ;;  %v690_v21 = vld [vmem:[#allocation7 + $0x8] sm:$0xff] }
  0xe0   : > { %v622_v17 = vsel %vm621_vm6, %v959_v45, %v618_v9  ;;  %vm624_vm7 = vcmp.eq.f32.partialorder %v623_v41, 8.507059e+37  ;;  %v656_v0 = vsel %vm655_vm5, %v654_v10, %v653_v60  ;;  %vm661_vm9 = vcmask 1046534   ;;  %720 = vmatpush.msra.mxu1 %v693_v30 }
  0xe1   : > { %v627_v18 = vsel %vm624_vm7, %v626_v15, %v622_v17  ;;  %v659_v19 = vsel %vm658_vm8, %v657_v16, %v656_v0  ;;  %v660_v22 = vrot.slane %v613_v14, 2  ;;  %vm664_vm10 = vcmask 1047559  }
  0xe2   : > { %v628_v23 = vmul.f32 %v627_v18, %v487_v55  ;;  %721 = vmatpush.msra.mxu1 %v692_v54 }
  0xe3   : > { %v662_v24 = vsel %vm661_vm9, %v660_v22, %v659_v19 }
  0xe4   : > { %v663_v20 = vrot.slane %v628_v23, 1  ;;  %722 = vmatpush.msra.mxu1 %v691_v61 }
  0xe6   : > { %v665_v26 = vsel %vm664_vm10, %v663_v20, %v662_v24  ;;  %723 = vmatpush.msra.mxu1 %v690_v21 }
  0xe7   : > { %862 = vmatmul.msk.f32.vlgmr.msra.gmra.mxu0 %vm415_vm0, %v665_v26 }
  0xe8   : > { %724 = vmatpush.msra.mxu1 %v689_v27 }
 0x164   : > { %v685_v31 = vpop.f32.mrf.mxu0 }
 0x165   : > { %v686_v32 = vadd.f32 %v942_v28, %v685_v31 }
 0x167   : > { %960 = vtanh.f32 %v686_v32 }
 0x16d   : > { %v961_v33 = vpop.eup %960 }
 0x16e   : > { %725 = vmatmul.f32.vlgmr.msra.gmra.mxu1 %v961_v33 }
 0x1eb   : > { %v726_v36 = vpop.f32.mrf.mxu1 }
 0x1ec   : > { %v727_v37 = vadd.f32 %v943_v35, %v726_v36 }
 0x1ee   : > { %729 = vst [vmem:[%s318_s8] sm:$0xff] %v727_v37 }
 0x1ef   : > { %1079 = shalt.err (!%p1076_p12)
}
 0x1f0   : > { %879 = dma.vmem_to_hbm [thread:$0]  (%p1236_p3), %s744_s16, 128, %s746_s17, %s731_s20  }
 0x1f1 PF: > { %s757_s9 = sand.u32 1, %s1110_s21   ;;  %p1599_p13 = scmp.ge.s32.totalorder %s1122_s24, 2 }
 0x1f2   : > { %s758_s13 = scalar_lea.sflag [#allocation4], %s757_s9 }
 0x1f3   : > { %p893_p0 = pnand %p1599_p13, %p1199_p6 }
 0x1f5   : > { %p894_p5 = pneg %p893_p0 }
 0x1f7   : > { %1105 = dma.done.wait (%p894_p5), %s758_s13, 128  }
 0x1f8   : > { %1107 = vsyncadd (%p894_p5), %s758_s13, 4294967168  ;;  %p20_p7 = scmp.ge.s32.totalorder %s1226_s18, 4   ;;  %s1600_s21 = smov %s1114_s22 }
 0x1f9   : > { %s1601_s22 = smov %s1118_s23  ;;  %s1602_s23 = smov %s1242_s29 }
 0x1fa   : > { %s1603_s24 = smov %s1226_s18  ;;  %22 = sbr.rel (!%p20_p7) target bundleno = 6 (0x6), region = 100 }
 0x1ff   :  { %764 = vsyncpa [#allocation3], 1 }
 0x200   :  { %766 = vsyncpa [#allocation3 + $0x1], 1 }
 0x201   :  { %767 = vsyncpa [#allocation6], 1 }
 0x202   :  { %768 = vsyncpa [#allocation4], 1 }
 0x203   :  { %770 = vsyncpa [#allocation4 + $0x1], 1 }

// kernel: tpu_custom_call.1
= control target key start
LH: loop header
LB: loop body
LE: loop exit
PB: predicated region body
PF: predicated region fallthrough
CT: control target
= control target key end

     0   :  { %11 = vsyncpa [#allocation3], 0  ;;  %s1567_s0 = inlined_call_operand.hbm [shape: f32[16,16,32], index: 0, kind: input, shape index: {}]   ;;  %s1568_s1 = inlined_call_operand.vmem [shape: s32[16,1], index: 1, kind: input, shape index: {}]   ;;  %s1569_s2 = inlined_call_operand.hbm [shape: f32[32,128], index: 2, kind: input, shape index: {}]   ;;  %s1570_s3 = inlined_call_operand.vmem [shape: f32[1,128], index: 3, kind: input, shape index: {}]   ;;  %s1571_s4 = inlined_call_operand.hbm [shape: f32[128,128], index: 4, kind: input, shape index: {}]   ;;  %s1572_s5 = inlined_call_operand.vmem [shape: f32[1,128], index: 5, kind: input, shape index: {}]   ;;  %s1573_s6 = inlined_call_operand.hbm [shape: f32[16,128], index: 6, kind: output, shape index: {}]  }
   0x1   :  { %13 = vsyncpa [#allocation3 + $0x1], 0 }
   0x2   :  { %14 = vsyncpa [#allocation6], 0 }
   0x3   :  { %15 = vsyncpa [#allocation4], 0 }
   0x4   :  { %17 = vsyncpa [#allocation4 + $0x1], 0  ;;  %s1164_s21 = smov 0   ;;  %s1166_s22 = smov 0  }
   0x5   :  { %s1168_s23 = smov 0   ;;  %s1170_s24 = smov 0  }
   0x6 LB: > { %s1185_s25 = sadd.s32 4294967295, %s1122_s24   ;;  %s847_s26 = sadd.s32 4294967294, %s1122_s24   ;;  %s1122_s24 = sphi %s1170_s24, %s1603_s24   ;;  %s1118_s23 = sphi %s1168_s23, %s1602_s23   ;;  %s1114_s22 = sphi %s1166_s22, %s1601_s22   ;;  %s1110_s21 = sphi %s1164_s21, %s1600_s21  }
   0x7   : > { %p43_p0 = scmp.ne.s32.totalorder %s1114_s22, %s1110_s21  ;;  %p44_p1 = scmp.eq.s32.totalorder %s1185_s25, 0 }
   0x8   : > { %p177_p2 = scmp.eq.s32.totalorder %s1185_s25, 1  ;;  %p183_p3 = scmp.eq.s32.totalorder %s847_s26, 1 }
   0x9   : > { %p1194_p4 = por %p44_p1, %p43_p0  ;;  %p848_p5 = scmp.ge.s32.totalorder %s1122_s24, 1 }
   0xa   : > { %p1199_p6 = por %p183_p3, %p43_p0  ;;  %p190_p7 = scmp.lt.s32.totalorder %s1122_s24, 3 }
   0xb   : > { %s201_s7 = sshll.u32 %s1569_s2, 4  ;;  %s1124_s9 = smov [#allocation5]   ;;  %s202_s7 = int_to_ptr.hbm [resolvable:$true] %s201_s7 }
   0xc   : > { %p1207_p8 = pnand %p848_p5, %p190_p7  ;;  %s203_s10 = sshll.u32 %s1124_s9, 4  ;;  %s204_s10 = int_to_ptr.vmem [resolvable:$true] %s203_s10 }
   0xd   : > { %s218_s13 = sshll.u32 %s1571_s4, 4  ;;  %s1574_s14 = smov 128   ;;  %s219_s13 = int_to_ptr.hbm [resolvable:$true] %s218_s13 }
   0xe   : > { %p881_p9 = pneg %p1207_p8  ;;  %s1575_s15 = smov 8  }
   0xf   : > { %s1127_s16 = smov [#allocation7]   ;;  %s1226_s18 = sadd.s32 1, %s1122_s24  }
  0x10   : > { %p882_p10 = pnand %p881_p9, %p44_p1  ;;  %s220_s17 = sshll.u32 %s1127_s16, 4  ;;  %s221_s17 = int_to_ptr.vmem [resolvable:$true] %s220_s17 }
  0x11   : > { %s30_s19 = sadd.s32 1, %s1118_s23  ;;  %s27_s20 = ssub.s32 %s1122_s24, %s1226_s18 }
  0x12   : > { %884 = dma.hbm_to_vmem [thread:$0]  (!%p882_p10), %s202_s7, 512, %s204_s10, [#allocation6], %s1574_s14, %s1574_s14, %s1575_s15  }
  0x13   : > { %887 = dma.hbm_to_vmem [thread:$0]  (!%p882_p10), %s219_s13, 2048, %s221_s17, [#allocation6], %s1574_s14, %s1574_s14, %s1575_s15  }
  0x14   : > { %p37_p12 = scmp.ne.s32.totalorder %s1118_s23, %s1114_s22  ;;  %p28_p13 = scmp.eq.s32.totalorder %s27_s20, 0 }
  0x15   : > { %p38_p0 = scmp.eq.s32.totalorder %s1122_s24, 0  ;;  %p898_p5 = scmp.lt.s32.totalorder %s1122_s24, 2 }
  0x16   : > { %p1236_p3 = por %p177_p2, %p37_p12  ;;  %s237_s30 = sand.u32 1, %s1118_s23  }
  0x17   : > { %s1242_s29 = scalar_select %p28_p13, %s1118_s23, %s30_s19  }
  0x18   : > { %p39_p7 = por %p38_p0, %p37_p12  ;;  %s852_s7 = sshll.u32 %s237_s30, 7 }
  0x19   : > { %s868_s9 = sshll.u32 %s1122_s24, 7  ;;  %s241_s13 = scalar_lea.vmem [#allocation2], %s852_s7 }
  0x1a   : > { %s247_s12 = scalar_lea.hbm %s1567_s0, %s868_s9  ;;  %s250_s16 = sshll.u32 %s241_s13, 4  ;;  %s251_s16 = int_to_ptr.vmem [resolvable:$true] %s250_s16 }
  0x1b   : > { %s248_s17 = sshll.u32 %s247_s12, 4  ;;  %p1249_p2 = pnand %p898_p5, %p39_p7  ;;  %s249_s17 = int_to_ptr.hbm [resolvable:$true] %s248_s17 }
  0x1c   : > { %s238_s19 = scalar_lea.sflag [#allocation3], %s237_s30  ;;  %s1022_s14 = sshra.s32 %s249_s17, 4  ;;  %s1023_s14 = int_to_ptr.hbm [resolvable:$true] %s1022_s14 }
  0x1d   : > { %s1024_s15 = scalar_lea.hbm %s1023_s14, 128  ;;  %p1026_p10 = pneg %p1249_p2 }
  0x1e   : > { %p1025_p9 = scmp.ne.s32.totalorder %s1023_s14, %s1024_s15  ;;  %s1029_s10 = scalar_lea.hbm %s1567_s0, 256 }
  0x1f   : > { %p1030_p0 = scmp.lt.s32.totalorder %s1023_s14, %s1567_s0  ;;  %p1031_p5 = scmp.lt.s32.totalorder %s1029_s10, %s1024_s15 }
  0x20   : > { %p1027_p12 = pnand %p1026_p10, %p1025_p9 }
  0x21   : > { %p1032_p7 = por %p1031_p5, %p1030_p0 }
  0x22   : > { %p1028_p13 = pneg %p1027_p12 }
  0x24   : > { %p1033_p11 = pnand %p1032_p7, %p1028_p13 }
  0x26   : > { %1036 = shalt.err (!%p1033_p11)
}
  0x27   : > { %s1581_s30 = smov 8   ;;  %s1582_s13 = smov 128  }
  0x28   : > { %891 = dma.hbm_to_vmem [thread:$0]  (!%p1249_p2), %s249_s17, 2048, %s251_s16, %s238_s19, %s1582_s13, %s1582_s13, %s1581_s30  }
  0x29   : > { %269 = sbr.rel (%p1207_p8) target bundleno = 497 (0x1f1), region = 44  ;;  %s1269_s9 = sand.u32 (!%p1207_p8), 1, %s1114_s22  }
  0x2a   : > { %s857_s14 = sshll.u32 (!%p1207_p8), %s1269_s9, 7  ;;  %s272_s15 = scalar_lea.sflag (!%p1207_p8), [#allocation3], %s1269_s9 }
  0x2b   : > { %s1273_s7 = scalar_lea.vmem (!%p1207_p8), [#allocation2], %s857_s14 }
  0x2e   : > { %1097 = dma.done.wait (%p1194_p4), %s272_s15, 2048  }
  0x2f   : > { %1099 = vsyncadd (%p1194_p4), %s272_s15, 4294965248 }
  0x30   : > { %1101 = dma.done.wait (%p44_p1), [#allocation6], 2560  }
  0x31   : > { %1103 = vsyncadd (%p44_p1), [#allocation6], 4294964736  ;;  %p320_p8 = scmp.lt.s32.totalorder %s1185_s25, 1  ;;  %v1128_v0 = vmov 0   ;;  %v325_v19 = vlaneseq  ;;  %v389_v22 = vld [vmem:[%s1273_s7 + $0x30] sm:$0xff]  ;;  %v390_v23 = vld [vmem:[%s1273_s7 + $0x38] sm:$0xff] }
  0x32   : > { %939 = vset.pattern.permute.xlu1 %v1128_v0  ;;  %940 = vset.pattern.permute.xlu0 %v1128_v0  ;;  %vm415_vm0 = vcmask 261120   ;;  %v391_v30 = vld [vmem:[%s1273_s7 + $0x40] sm:$0xff]  ;;  %v392_v31 = vld [vmem:[%s1273_s7 + $0x48] sm:$0xff]  ;;  %v397_v41 = vld [vmem:[%s1273_s7 + $0x70] sm:$0xff]  ;;  %s860_s11 = sshll.u32 %s1269_s9, 3  ;;  %s864_s12 = sshll.u32 %s1185_s25, 3 }
  0x33   : > { %s321_s8 = scalar_select %p320_p8, %s1185_s25, 1  ;;  %941 = vset.pattern.permute.xlu2 %v1128_v0  ;;  %v1288_v20 = vshrl.u32 %v325_v19, 7  ;;  %v398_v42 = vld [vmem:[%s1273_s7 + $0x78] sm:$0xff]  ;;  %v383_v53 = vld [vmem:[%s1273_s7] sm:$0xff]  ;;  %v384_v54 = vld [vmem:[%s1273_s7 + $0x8] sm:$0xff] }
  0x34   : > { %s741_s14 = scalar_lea.hbm %s1573_s6, %s864_s12  ;;  %s731_s20 = scalar_lea.sflag [#allocation4], %s1269_s9 }
  0x35   : > { %s861_s16 = sshll.u32 %s321_s8, 3  ;;  %v1291_v21 = vadd.s32 8, %v1288_v20  ;;  %s318_s8 = scalar_lea.vmem [#allocation8], %s860_s11 }
  0x36   : > { %s323_s27 = scalar_lea.vmem %s1568_s1, %s861_s16  ;;  %s743_s16 = sshll.u32 %s318_s8, 4  ;;  %s744_s16 = int_to_ptr.vmem [resolvable:$true] %s743_s16 }
  0x37   : > { %v324_v1 = vld [vmem:[%s323_s27] sm:$0xff]  ;;  %s745_s17 = sshll.u32 %s741_s14, 4  ;;  %s1072_s12 = scalar_lea.hbm %s1573_s6, 16  ;;  %s746_s17 = int_to_ptr.hbm [resolvable:$true] %s745_s17 }
  0x38   : > { %v335_v2 = vperm.slane %v324_v1, 0  ;;  %v488_v3 = vcvt.s32.f32 %v324_v1  ;;  %v330_v4 = vrot.slane %v324_v1, 3  ;;  %v329_v7 = vrot.slane %v324_v1, 2  ;;  %s1066_s27 = sshra.s32 %s746_s17, 4  ;;  %s1067_s27 = int_to_ptr.hbm [resolvable:$true] %s1066_s27 }
  0x39   : > { %v328_v8 = vrot.slane %v324_v1, 1  ;;  %v331_v9 = vrot.slane %v324_v1, 4  ;;  %v333_v13 = vrot.slane %v324_v1, 6  ;;  %v332_v14 = vrot.slane %v324_v1, 5  ;;  %s1068_s25 = scalar_lea.hbm %s1067_s27, 8  ;;  %p1073_p2 = scmp.lt.s32.totalorder %s1067_s27, %s1573_s6 }
  0x3a   : > { %344 = vperm.xlu1 %939, %v335_v2   ;;  %v489_v5 = vmax.f32 %v488_v3, 1.0  ;;  %v338_v6 = vperm.slane %v330_v4, 0  ;;  %v337_v10 = vperm.slane %v329_v7, 0  ;;  %v334_v15 = vrot.slane %v324_v1, 7  ;;  %p1069_p1 = scmp.ne.s32.totalorder %s1067_s27, %s1068_s25  ;;  %p1074_p9 = scmp.lt.s32.totalorder %s1072_s12, %s1068_s25 }
  0x3b   : > { %v336_v11 = vperm.slane %v328_v8, 0  ;;  %v339_v12 = vperm.slane %v331_v9, 0  ;;  %v341_v16 = vperm.slane %v333_v13, 0  ;;  %v340_v17 = vperm.slane %v332_v14, 0  ;;  %v387_v8 = vld [vmem:[%s1273_s7 + $0x20] sm:$0xff]  ;;  %v388_v9 = vld [vmem:[%s1273_s7 + $0x28] sm:$0xff] }
  0x3c   : > { %492 = vperm.xlu0 %940, %v489_v5   ;;  %353 = vperm.xlu2 %941, %v338_v6   ;;  %v342_v18 = vperm.slane %v334_v15, 0  ;;  %v632_v5 = vld [vmem:[#allocation5 + $0x18] sm:$0xff]  ;;  %v631_v6 = vld [vmem:[#allocation5 + $0x10] sm:$0xff]  ;;  %p1070_p4 = pnand %p1069_p1, %p1236_p3  ;;  %p1075_p10 = por %p1074_p9, %p1073_p2 }
  0x3d   : > { %680 = vmatpush.msra.mxu0 %v632_v5 }
  0x3e   : > { %p1071_p11 = pneg %p1070_p4 }
  0x3f   : > { %681 = vmatpush.msra.mxu0 %v631_v6 }
  0x40   : > { %p1076_p12 = pnand %p1075_p10, %p1071_p11 }
  0x42   : > { %350 = vperm.xlu1 %939, %v337_v10   ;;  %v630_v10 = vld [vmem:[#allocation5 + $0x8] sm:$0xff] }
  0x43   : > { %682 = vmatpush.msra.mxu0 %v630_v10 }
  0x44   : > { %347 = vperm.xlu0 %940, %v336_v11   ;;  %356 = vperm.xlu2 %941, %v339_v12  }
  0x4a   : > { %362 = vperm.xlu1 %939, %v341_v16   ;;  %v629_v16 = vld [vmem:[#allocation5] sm:$0xff] }
  0x4b   : > { %683 = vmatpush.msra.mxu0 %v629_v16 }
  0x4c   : > { %359 = vperm.xlu0 %940, %v340_v17   ;;  %365 = vperm.xlu2 %941, %v342_v18  }
  0x96   : > { %v354_v24 = vpop.permute.xlu2 %353 }
  0x97   : > { %vm373_vm1 = vcmp.lt.s32.totalorder %v1288_v20, %v354_v24  ;;  %vm374_vm2 = vcmp.lt.s32.totalorder %v1291_v21, %v354_v24 }
  0x98   : > { %v405_v25 = vsel %vm373_vm1, %v389_v22, 0.0  ;;  %v406_v26 = vsel %vm374_vm2, %v390_v23, 0.0  ;;  %v385_v22 = vld [vmem:[%s1273_s7 + $0x10] sm:$0xff]  ;;  %v386_v23 = vld [vmem:[%s1273_s7 + $0x18] sm:$0xff] }
  0x99   : > { %v443_v27 = vsel %vm415_vm0, %v405_v25, 0.0  ;;  %v444_v28 = vsel %vm415_vm0, %v406_v26, 0.0 }
  0x9a   : > { %v445_v29 = vadd.f32 %v444_v28, %v443_v27 }
  0x9c   : > { %v446_v33 = vrot.slane %v445_v29, 4 }
  0x9e   : > { %v357_v32 = vpop.permute.xlu2 %356  ;;  %v447_v39 = vadd.f32 %v446_v33, %v445_v29 }
  0x9f   : > { %vm375_vm3 = vcmp.lt.s32.totalorder %v1288_v20, %v357_v32  ;;  %vm376_vm4 = vcmp.lt.s32.totalorder %v1291_v21, %v357_v32 }
  0xa0   : > { %v407_v34 = vsel %vm375_vm3, %v391_v30, 0.0  ;;  %v408_v35 = vsel %vm376_vm4, %v392_v31, 0.0  ;;  %v448_v45 = vrot.slane %v447_v39, 2 }
  0xa1   : > { %v452_v36 = vsel %vm415_vm0, %v407_v34, 0.0  ;;  %v453_v37 = vsel %vm415_vm0, %v408_v35, 0.0 }
  0xa2   : > { %v454_v38 = vadd.f32 %v453_v37, %v452_v36  ;;  %v449_v52 = vadd.f32 %v448_v45, %v447_v39 }
  0xa4   : > { %v455_v40 = vrot.slane %v454_v38, 4  ;;  %v450_v61 = vrot.slane %v449_v52, 1 }
  0xa6   : > { %v456_v43 = vadd.f32 %v455_v40, %v454_v38  ;;  %v366_v44 = vpop.permute.xlu2 %365  ;;  %v1329_v11 = vadd.f32 %v450_v61, %v449_v52 }
  0xa7   : > { %vm381_vm5 = vcmp.lt.s32.totalorder %v1288_v20, %v366_v44  ;;  %vm382_vm6 = vcmp.lt.s32.totalorder %v1291_v21, %v366_v44 }
  0xa8   : > { %v457_v46 = vrot.slane %v456_v43, 2  ;;  %v413_v47 = vsel %vm381_vm5, %v397_v41, 0.0  ;;  %v414_v48 = vsel %vm382_vm6, %v398_v42, 0.0 }
  0xa9   : > { %v479_v49 = vsel %vm415_vm0, %v413_v47, 0.0  ;;  %v480_v50 = vsel %vm415_vm0, %v414_v48, 0.0  ;;  %v395_v47 = vld [vmem:[%s1273_s7 + $0x60] sm:$0xff] }
  0xaa   : > { %v481_v51 = vadd.f32 %v480_v50, %v479_v49  ;;  %v458_v55 = vadd.f32 %v457_v46, %v456_v43 }
  0xac   : > { %v482_v56 = vrot.slane %v481_v51, 4  ;;  %v345_v57 = vpop.permute.xlu1 %344  ;;  %v459_v1 = vrot.slane %v458_v55, 1 }
  0xad   : > { %vm367_vm7 = vcmp.lt.s32.totalorder %v1288_v20, %v345_v57  ;;  %vm368_vm8 = vcmp.lt.s32.totalorder %v1291_v21, %v345_v57 }
  0xae   : > { %v399_v58 = vsel %vm367_vm7, %v383_v53, 0.0  ;;  %v400_v59 = vsel %vm368_vm8, %v384_v54, 0.0  ;;  %v1315_v60 = vpop.permute.xlu0 %492  ;;  %v483_v2 = vadd.f32 %v482_v56, %v481_v51  ;;  %v1331_v12 = vadd.f32 %v459_v1, %v458_v55  ;;  %v396_v51 = vld [vmem:[%s1273_s7 + $0x68] sm:$0xff] }
  0xaf   : > { %v416_v62 = vsel %vm415_vm0, %v399_v58, 0.0  ;;  %v417_v63 = vsel %vm415_vm0, %v400_v59, 0.0  ;;  %v1320_v0 = vrot.slane %v1315_v60, 2  ;;  %v1323_v4 = vrot.slane %v1315_v60, 1 }
  0xb0   : > { %v418_v3 = vadd.f32 %v417_v63, %v416_v62  ;;  %v484_v13 = vrot.slane %v483_v2, 2  ;;  %v1340_v25 = vrot.slane %v1315_v60, 3  ;;  %v393_v62 = vld [vmem:[%s1273_s7 + $0x50] sm:$0xff] }
  0xb1   : > { %944 = vrcp.f32 %v1320_v0  ;;  %v550_v15 = vand.u32 2147483648, %v1320_v0  ;;  %vm544_vm13 = vweird.f32 %v1320_v0  ;;  %v548_v32 = vand.u32 2147483647, %v1320_v0 }
  0xb2   : > { %v419_v7 = vrot.slane %v418_v3, 4  ;;  %946 = vrcp.f32 %v1323_v4  ;;  %v1350_v30 = vadd.f32 %v484_v13, %v483_v2  ;;  %vm529_vm14 = vweird.f32 %v1323_v4 }
  0xb3   : > { %948 = vrcp.f32 %v1315_v60  ;;  %v1356_v34 = vor.u32 1.1754944e-38, %v550_v15  ;;  %v533_v40 = vand.u32 2147483647, %v1323_v4  ;;  %v535_v45 = vand.u32 2147483648, %v1323_v4 }
  0xb4   : > { %v351_v14 = vpop.permute.xlu1 %350  ;;  %v420_v17 = vadd.f32 %v419_v7, %v418_v3  ;;  %vm1381_vm5 = vcmp.eq.f32.partialorder %v548_v32, 8.507059e+37  ;;  %v394_v7 = vld [vmem:[%s1273_s7 + $0x58] sm:$0xff]  ;;  %v1398_v13 = vrot.slane %v1315_v60, 4  ;;  %950 = vrcp.f32 %v1340_v25 }
  0xb5   : > { %vm371_vm9 = vcmp.lt.s32.totalorder %v1288_v20, %v351_v14  ;;  %vm372_vm10 = vcmp.lt.s32.totalorder %v1291_v21, %v351_v14 }
  0xb6   : > { %v403_v18 = vsel %vm371_vm9, %v387_v8, 0.0  ;;  %v404_v19 = vsel %vm372_vm10, %v388_v9, 0.0  ;;  %v348_v24 = vpop.permute.xlu0 %347  ;;  %v421_v43 = vrot.slane %v420_v17, 2  ;;  %vm514_vm10 = vweird.f32 %v1315_v60 }
  0xb7   : > { %v1342_v26 = vpop.eup %944  ;;  %v434_v27 = vsel %vm415_vm0, %v403_v18, 0.0  ;;  %v435_v28 = vsel %vm415_vm0, %v404_v19, 0.0  ;;  %vm369_vm11 = vcmp.lt.s32.totalorder %v1288_v20, %v348_v24  ;;  %vm370_vm12 = vcmp.lt.s32.totalorder %v1291_v21, %v348_v24 }
  0xb8   : > { %v1348_v29 = vpop.eup %946  ;;  %v540_v31 = vmul.f32 %v1342_v26, %v1320_v0  ;;  %v436_v33 = vadd.f32 %v435_v28, %v434_v27  ;;  %v401_v36 = vsel %vm369_vm11, %v385_v22, 0.0  ;;  %v402_v37 = vsel %vm370_vm12, %v386_v23, 0.0  ;;  %v699_v0 = vld [vmem:[#allocation7 + $0x50] sm:$0xff] }
  0xb9   : > { %v525_v35 = vmul.f32 %v1348_v29, %v1323_v4  ;;  %v425_v41 = vsel %vm415_vm0, %v401_v36, 0.0  ;;  %v1363_v42 = vpop.eup %948  ;;  %v426_v46 = vsel %vm415_vm0, %v402_v37, 0.0  ;;  %vm545_vm15 = vweird.f32 %v1342_v26 }
  0xba   : > { %v541_v38 = vsub.f32 1.0, %v540_v31  ;;  %v437_v39 = vrot.slane %v436_v33, 4  ;;  %v427_v50 = vadd.f32 %v426_v46, %v425_v41  ;;  %vm530_vm1 = vweird.f32 %v1348_v29  ;;  %vm1392_vm6 = vmor %vm544_vm13, %vm545_vm15 }
  0xbb   : > { %v526_v44 = vsub.f32 1.0, %v525_v35  ;;  %v510_v63 = vmul.f32 %v1363_v42, %v1315_v60  ;;  %v422_v8 = vadd.f32 %v421_v43, %v420_v17  ;;  %vm1409_vm8 = vmor %vm529_vm14, %vm530_vm1  ;;  %vm515_vm9 = vweird.f32 %v1363_v42 }
  0xbc   : > { %v542_v48 = vmul.f32 %v1342_v26, %v541_v38  ;;  %v438_v49 = vadd.f32 %v437_v39, %v436_v33  ;;  %v363_v52 = vpop.permute.xlu1 %362  ;;  %v428_v56 = vrot.slane %v427_v50, 4  ;;  %v518_v33 = vand.u32 2147483647, %v1315_v60  ;;  %vm1430_vm12 = vmor %vm514_vm10, %vm515_vm9 }
  0xbd   : > { %v527_v53 = vmul.f32 %v1348_v29, %v526_v44  ;;  %vm379_vm2 = vcmp.lt.s32.totalorder %v1288_v20, %v363_v52  ;;  %vm380_vm3 = vcmp.lt.s32.totalorder %v1291_v21, %v363_v52  ;;  %v511_v22 = vsub.f32 1.0, %v510_v63  ;;  %v701_v63 = vld [vmem:[#allocation7 + $0x60] sm:$0xff] }
  0xbe   : > { %v543_v54 = vadd.f32 %v1342_v26, %v542_v48  ;;  %v439_v55 = vrot.slane %v438_v49, 2  ;;  %v411_v57 = vsel %vm379_vm2, %v395_v47, 0.0  ;;  %v360_v58 = vpop.permute.xlu0 %359  ;;  %v412_v59 = vsel %vm380_vm3, %v396_v51, 0.0 }
  0xbf   : > { %v470_v61 = vsel %vm415_vm0, %v411_v57, 0.0  ;;  %vm377_vm4 = vcmp.lt.s32.totalorder %v1288_v20, %v360_v58  ;;  %v528_v3 = vadd.f32 %v1348_v29, %v527_v53  ;;  %v429_v5 = vadd.f32 %v428_v56, %v427_v50  ;;  %v951_v57 = vpop.eup %950 }
  0xc0   : > { %v440_v2 = vadd.f32 %v439_v55, %v438_v49  ;;  %v471_v6 = vsel %vm415_vm0, %v412_v59, 0.0  ;;  %vm378_vm7 = vcmp.lt.s32.totalorder %v1291_v21, %v360_v58  ;;  %v547_v14 = vsel %vm1392_vm6, %v1342_v26, %v543_v54 }
  0xc1   : > { %v472_v10 = vadd.f32 %v471_v6, %v470_v61  ;;  %v430_v16 = vrot.slane %v429_v5, 2  ;;  %v409_v17 = vsel %vm377_vm4, %v393_v62, 0.0  ;;  %v410_v18 = vsel %vm378_vm7, %v394_v7, 0.0 }
  0xc2   : > { %v441_v15 = vrot.slane %v440_v2, 1  ;;  %v461_v19 = vsel %vm415_vm0, %v409_v17, 0.0  ;;  %v532_v24 = vsel %vm1409_vm8, %v1348_v29, %v528_v3  ;;  %v462_v26 = vsel %vm415_vm0, %v410_v18, 0.0 }
  0xc3   : > { %v473_v21 = vrot.slane %v472_v10, 4  ;;  %v431_v20 = vadd.f32 %v430_v16, %v429_v5  ;;  %v463_v28 = vadd.f32 %v462_v26, %v461_v19  ;;  %v512_v31 = vmul.f32 %v1363_v42, %v511_v22 }
  0xc4   : > { %v442_v23 = vadd.f32 %v441_v15, %v440_v2  ;;  %v520_v35 = vand.u32 2147483648, %v1315_v60  ;;  %vm534_vm11 = vcmp.eq.f32.partialorder %v533_v40, 8.507059e+37  ;;  %v536_v38 = vor.u32 1.1754944e-38, %v535_v45  ;;  %v704_v40 = vld [vmem:[#allocation7 + $0x78] sm:$0xff]  ;;  %v703_v45 = vld [vmem:[#allocation7 + $0x70] sm:$0xff] }
  0xc5   : > { %v474_v27 = vadd.f32 %v473_v21, %v472_v10  ;;  %v432_v32 = vrot.slane %v431_v20, 1  ;;  %v464_v37 = vrot.slane %v463_v28, 4  ;;  %v513_v29 = vadd.f32 %v1363_v42, %v512_v31  ;;  %709 = vmatpush.msra.mxu1 %v704_v40 }
  0xc6   : > { %v1428_v41 = vrot.slane %v1315_v60, 5  ;;  %v423_v44 = vrot.slane %v422_v8, 1  ;;  %v552_v46 = vsel %vm1381_vm5, %v1356_v34, %v547_v14  ;;  %v537_v49 = vsel %vm534_vm11, %v536_v38, %v532_v24  ;;  %v702_v34 = vld [vmem:[#allocation7 + $0x68] sm:$0xff] }
  0xc7   : > { %v475_v36 = vrot.slane %v474_v27, 2  ;;  %v433_v39 = vadd.f32 %v432_v32, %v431_v20  ;;  %v465_v47 = vadd.f32 %v464_v37, %v463_v28  ;;  %v517_v4 = vsel %vm1430_vm12, %v1363_v42, %v513_v29  ;;  %710 = vmatpush.msra.mxu1 %v703_v45  ;;  %v698_v24 = vld [vmem:[#allocation7 + $0x48] sm:$0xff]  ;;  %v697_v37 = vld [vmem:[#allocation7 + $0x40] sm:$0xff] }
  0xc8   : > { %v1440_v48 = vmul.f32 %v552_v46, %v442_v23  ;;  %v521_v51 = vor.u32 1.1754944e-38, %v520_v35  ;;  %vm519_vm13 = vcmp.eq.f32.partialorder %v518_v33, 8.507059e+37  ;;  %952 = vrcp.f32 %v1398_v13  ;;  %v943_v35 = vld [vmem:[%s1572_s5] ss:$0 sm:$0xff] }
  0xc9   : > { %v476_v50 = vadd.f32 %v475_v36, %v474_v27  ;;  %v1442_v52 = vmul.f32 %v537_v49, %v433_v39  ;;  %v466_v53 = vrot.slane %v465_v47, 2  ;;  %v486_v54 = vrot.slane %v1350_v30, 1  ;;  %711 = vmatpush.msra.mxu1 %v702_v34 }
  0xca   : > { %v1447_v55 = vrot.slane %v1315_v60, 6  ;;  %v522_v42 = vsel %vm519_vm13, %v521_v51, %v517_v4  ;;  %v563_v56 = vand.u32 2147483647, %v1340_v25  ;;  %v424_v58 = vadd.f32 %v423_v44, %v422_v8 }
  0xcb   : > { %v467_v59 = vadd.f32 %v466_v53, %v465_v47  ;;  %v1451_v61 = vrot.slane %v1315_v60, 7  ;;  %v565_v62 = vand.u32 2147483648, %v1340_v25  ;;  %v648_v1 = vrot.slane %v1440_v48, 6  ;;  %v700_v60 = vld [vmem:[#allocation7 + $0x58] sm:$0xff]  ;;  %712 = vmatpush.msra.mxu1 %v701_v63  ;;  %v695_v53 = vld [vmem:[#allocation7 + $0x30] sm:$0xff] }
  0xcc   : > { %v477_v2 = vrot.slane %v476_v50, 1  ;;  %v555_v3 = vmul.f32 %v951_v57, %v1340_v25  ;;  %954 = vrcp.f32 %v1428_v41  ;;  %v645_v5 = vrot.slane %v1442_v52, 7  ;;  %v696_v47 = vld [vmem:[#allocation7 + $0x38] sm:$0xff] }
  0xcd   : > { %v523_v6 = vmul.f32 %v522_v42, %v424_v58  ;;  %vm559_vm14 = vweird.f32 %v1340_v25  ;;  %v578_v7 = vand.u32 2147483647, %v1398_v13  ;;  %vm1460_vm15 = vcmp.eq.f32.partialorder %v563_v56, 8.507059e+37  ;;  %713 = vmatpush.msra.mxu1 %v700_v60 }
  0xce   : > { %v556_v8 = vsub.f32 1.0, %v555_v3  ;;  %v580_v10 = vand.u32 2147483648, %v1398_v13  ;;  %956 = vrcp.f32 %v1447_v55  ;;  %v953_v14 = vpop.eup %952  ;;  %v468_v15 = vrot.slane %v467_v59, 1 }
  0xcf   : > { %v566_v16 = vor.u32 1.1754944e-38, %v565_v62  ;;  %vm574_vm1 = vweird.f32 %v1398_v13  ;;  %v593_v17 = vand.u32 2147483647, %v1428_v41  ;;  %v1468_v21 = vadd.f32 %v477_v2, %v476_v50  ;;  %714 = vmatpush.msra.mxu1 %v699_v0 }
  0xd0   : > { %v557_v18 = vmul.f32 %v951_v57, %v556_v8  ;;  %vm560_vm2 = vweird.f32 %v951_v57  ;;  %v570_v19 = vmul.f32 %v953_v14, %v1398_v13  ;;  %vm1471_vm3 = vcmp.eq.f32.partialorder %v578_v7, 8.507059e+37  ;;  %v694_v13 = vld [vmem:[#allocation7 + $0x28] sm:$0xff] }
  0xd1   : > { %vm589_vm4 = vweird.f32 %v1428_v41  ;;  %v595_v23 = vand.u32 2147483648, %v1428_v41  ;;  %958 = vrcp.f32 %v1451_v61  ;;  %v581_v28 = vor.u32 1.1754944e-38, %v580_v10  ;;  %vm561_vm5 = vmor %vm559_vm14, %vm560_vm2  ;;  %715 = vmatpush.msra.mxu1 %v698_v24 }
  0xd2   : > { %v955_v20 = vpop.eup %954  ;;  %v558_v26 = vadd.f32 %v951_v57, %v557_v18  ;;  %v571_v27 = vsub.f32 1.0, %v570_v19  ;;  %v608_v31 = vand.u32 2147483647, %v1447_v55  ;;  %v469_v32 = vadd.f32 %v468_v15, %v467_v59 }
  0xd3   : > { %v585_v33 = vmul.f32 %v955_v20, %v1428_v41  ;;  %vm1483_vm6 = vcmp.eq.f32.partialorder %v593_v17, 8.507059e+37  ;;  %vm604_vm7 = vweird.f32 %v1447_v55  ;;  %v610_v36 = vand.u32 2147483648, %v1447_v55  ;;  %716 = vmatpush.msra.mxu1 %v697_v37 }
  0xd4   : > { %v957_v29 = vpop.eup %956  ;;  %v562_v38 = vsel %vm561_vm5, %v951_v57, %v558_v26  ;;  %v572_v39 = vmul.f32 %v953_v14, %v571_v27  ;;  %vm575_vm8 = vweird.f32 %v953_v14  ;;  %vm646_vm9 = vcmask 1041409   ;;  %v689_v27 = vld [vmem:[#allocation7] sm:$0xff] }
  0xd5   : > { %v567_v25 = vsel %vm1460_vm15, %v566_v16, %v562_v38  ;;  %v586_v43 = vsub.f32 1.0, %v585_v33  ;;  %v596_v44 = vor.u32 1.1754944e-38, %v595_v23  ;;  %v600_v46 = vmul.f32 %v957_v29, %v1447_v55  ;;  %vm576_vm13 = vmor %vm574_vm1, %vm575_vm8  ;;  %717 = vmatpush.msra.mxu1 %v696_v47 }
  0xd6   : > { %v573_v4 = vadd.f32 %v953_v14, %v572_v39  ;;  %vm590_vm10 = vweird.f32 %v955_v20  ;;  %vm1492_vm11 = vcmp.eq.f32.partialorder %v608_v31, 8.507059e+37  ;;  %vm649_vm12 = vcmask 1042434  }
  0xd7   : > { %v959_v45 = vpop.eup %958  ;;  %v568_v49 = vmul.f32 %v567_v25, %v1329_v11  ;;  %v587_v50 = vmul.f32 %v955_v20, %v586_v43  ;;  %v601_v51 = vsub.f32 1.0, %v600_v46  ;;  %v647_v52 = vsel %vm646_vm9, %v645_v5, %v523_v6  ;;  %vm591_vm1 = vmor %vm589_vm4, %vm590_vm10  ;;  %718 = vmatpush.msra.mxu1 %v695_v53 }
  0xd8   : > { %v577_v34 = vsel %vm576_vm13, %v953_v14, %v573_v4  ;;  %v611_v42 = vor.u32 1.1754944e-38, %v610_v36  ;;  %v615_v56 = vmul.f32 %v959_v45, %v1451_v61  ;;  %vm619_vm14 = vweird.f32 %v1451_v61 }
  0xd9   : > { %v582_v57 = vsel %vm1471_vm3, %v581_v28, %v577_v34  ;;  %v588_v11 = vadd.f32 %v955_v20, %v587_v50  ;;  %v602_v58 = vmul.f32 %v957_v29, %v601_v51  ;;  %vm605_vm15 = vweird.f32 %v957_v29  ;;  %719 = vmatpush.msra.mxu1 %v694_v13  ;;  %v942_v28 = vld [vmem:[%s1570_s3] ss:$0 sm:$0xff] }
  0xda   : > { %v583_v59 = vmul.f32 %v582_v57, %v1331_v12  ;;  %v616_v62 = vsub.f32 1.0, %v615_v56  ;;  %v650_v63 = vsel %vm649_vm12, %v648_v1, %v647_v52  ;;  %vm652_vm2 = vcmask 1043459   ;;  %vm606_vm3 = vmor %vm604_vm7, %vm605_vm15 }
  0xdb   : > { %v592_v2 = vsel %vm591_vm1, %v955_v20, %v588_v11  ;;  %v603_v3 = vadd.f32 %v957_v29, %v602_v58  ;;  %v625_v5 = vand.u32 2147483648, %v1451_v61  ;;  %v651_v6 = vrot.slane %v568_v49, 5 }
  0xdc   : > { %v597_v7 = vsel %vm1483_vm6, %v596_v44, %v592_v2  ;;  %v617_v12 = vmul.f32 %v959_v45, %v616_v62  ;;  %vm620_vm4 = vweird.f32 %v959_v45  ;;  %v623_v41 = vand.u32 2147483647, %v1451_v61  ;;  %v691_v61 = vld [vmem:[#allocation7 + $0x10] sm:$0xff] }
  0xdd   : > { %v598_v48 = vmul.f32 %v597_v7, %v469_v32  ;;  %v607_v1 = vsel %vm606_vm3, %v957_v29, %v603_v3  ;;  %v653_v60 = vsel %vm652_vm2, %v651_v6, %v650_v63  ;;  %vm655_vm5 = vcmask 1044484   ;;  %vm621_vm6 = vmor %vm619_vm14, %vm620_vm4 }
  0xde   : > { %v612_v8 = vsel %vm1492_vm11, %v611_v42, %v607_v1  ;;  %v618_v9 = vadd.f32 %v959_v45, %v617_v12  ;;  %v654_v10 = vrot.slane %v583_v59, 4  ;;  %vm658_vm8 = vcmask 1045509  }
  0xdf   : > { %v487_v55 = vadd.f32 %v486_v54, %v1350_v30  ;;  %v613_v14 = vmul.f32 %v612_v8, %v1468_v21  ;;  %v626_v15 = vor.u32 1.1754944e-38, %v625_v5  ;;  %v657_v16 = vrot.slane %v598_v48, 3  ;;  %v693_v30 = vld [vmem:[#allocation7 + $0x20] sm:$0xff]  ;;  %v692_v54 = vld [vmem:[#allocation7 + $0x18] sm:$0xff]  ;;  %v690_v21 = vld [vmem:[#allocation7 + $0x8] sm:$0xff] }
  0xe0   : > { %v622_v17 = vsel %vm621_vm6, %v959_v45, %v618_v9  ;;  %vm624_vm7 = vcmp.eq.f32.partialorder %v623_v41, 8.507059e+37  ;;  %v656_v0 = vsel %vm655_vm5, %v654_v10, %v653_v60  ;;  %vm661_vm9 = vcmask 1046534   ;;  %720 = vmatpush.msra.mxu1 %v693_v30 }
  0xe1   : > { %v627_v18 = vsel %vm624_vm7, %v626_v15, %v622_v17  ;;  %v659_v19 = vsel %vm658_vm8, %v657_v16, %v656_v0  ;;  %v660_v22 = vrot.slane %v613_v14, 2  ;;  %vm664_vm10 = vcmask 1047559  }
  0xe2   : > { %v628_v23 = vmul.f32 %v627_v18, %v487_v55  ;;  %721 = vmatpush.msra.mxu1 %v692_v54 }
  0xe3   : > { %v662_v24 = vsel %vm661_vm9, %v660_v22, %v659_v19 }
  0xe4   : > { %v663_v20 = vrot.slane %v628_v23, 1  ;;  %722 = vmatpush.msra.mxu1 %v691_v61 }
  0xe6   : > { %v665_v26 = vsel %vm664_vm10, %v663_v20, %v662_v24  ;;  %723 = vmatpush.msra.mxu1 %v690_v21 }
  0xe7   : > { %862 = vmatmul.msk.f32.vlgmr.msra.gmra.mxu0 %vm415_vm0, %v665_v26 }
  0xe8   : > { %724 = vmatpush.msra.mxu1 %v689_v27 }
 0x164   : > { %v685_v31 = vpop.f32.mrf.mxu0 }
 0x165   : > { %v686_v32 = vadd.f32 %v942_v28, %v685_v31 }
 0x167   : > { %960 = vtanh.f32 %v686_v32 }
 0x16d   : > { %v961_v33 = vpop.eup %960 }
 0x16e   : > { %725 = vmatmul.f32.vlgmr.msra.gmra.mxu1 %v961_v33 }
 0x1eb   : > { %v726_v36 = vpop.f32.mrf.mxu1 }
 0x1ec   : > { %v727_v37 = vadd.f32 %v943_v35, %v726_v36 }
 0x1ee   : > { %729 = vst [vmem:[%s318_s8] sm:$0xff] %v727_v37 }
 0x1ef   : > { %1079 = shalt.err (!%p1076_p12)
}
 0x1f0   : > { %879 = dma.vmem_to_hbm [thread:$0]  (%p1236_p3), %s744_s16, 128, %s746_s17, %s731_s20  }
 0x1f1 PF: > { %s757_s9 = sand.u32 1, %s1110_s21   ;;  %p1599_p13 = scmp.ge.s32.totalorder %s1122_s24, 2 }
 0x1f2   : > { %s758_s13 = scalar_lea.sflag [#allocation4], %s757_s9 }
 0x1f3   : > { %p893_p0 = pnand %p1599_p13, %p1199_p6 }
 0x1f5   : > { %p894_p5 = pneg %p893_p0 }
 0x1f7   : > { %1105 = dma.done.wait (%p894_p5), %s758_s13, 128  }
 0x1f8   : > { %1107 = vsyncadd (%p894_p5), %s758_s13, 4294967168  ;;  %p20_p7 = scmp.ge.s32.totalorder %s1226_s18, 4   ;;  %s1600_s21 = smov %s1114_s22 }
 0x1f9   : > { %s1601_s22 = smov %s1118_s23  ;;  %s1602_s23 = smov %s1242_s29 }
 0x1fa   : > { %s1603_s24 = smov %s1226_s18  ;;  %22 = sbr.rel (!%p20_p7) target bundleno = 6 (0x6), region = 100 }
 0x1ff   :  { %764 = vsyncpa [#allocation3], 1 }
 0x200   :  { %766 = vsyncpa [#allocation3 + $0x1], 1 }
 0x201   :  { %767 = vsyncpa [#allocation6], 1 }
 0x202   :  { %768 = vsyncpa [#allocation4], 1 }
 0x203   :  { %770 = vsyncpa [#allocation4 + $0x1], 1 }

</bundles_post_ra>
